<compile_context>
chip_gen: v7x
topology: tpu7x:2x2x1
jax: 0.10.0
libtpu: 0.0.40
codegen_flags: <defaults>
</compile_context>

<pallas_src>
import functools
import math

import jax
import jax.numpy as jnp
from jax import lax
from jax.experimental import pallas as pl
from jax.experimental.pallas import tpu as pltpu


def _arcmargin_kernel(xn_ref, w_ref, label_ref, out_ref, *,
                      scale, cos_m, sin_m, th, mm, easy_margin, ls_eps,
                      num_classes, tile_c, mask_tail):
    # xn_ref    : (TILE_B, D)       L2-normalized inputs (bf16 or f32)
    # w_ref     : (TILE_C, D)       RAW (un-normalized) weight tile
    # label_ref : (TILE_B, 1)       int32 target class per row
    # out_ref   : (TILE_B, TILE_C)  f32 logits tile
    xn = xn_ref[...]
    w = w_ref[...]
    labels = label_ref[...]

    # Raw dot on the streamed dtype (bf16 weights -> native bf16 MXU path),
    # f32 accumulation.  Normalization is applied after, as a column scale.
    cos_raw = lax.dot_general(
        xn, w, dimension_numbers=(((1,), (1,)), ((), ())),
        preferred_element_type=jnp.float32)                      # (TILE_B, TILE_C)

    # Per-row ||w||^2 on the (mostly idle) MXU instead of an XLU lane-reduce:
    #   ones(1, D) @ (w*w)^T  ->  (1, TILE_C)
    w32 = w.astype(jnp.float32)
    wsq = w32 * w32
    ones_row = jnp.ones((1, wsq.shape[1]), dtype=jnp.float32)
    w_sumsq = lax.dot_general(
        ones_row, wsq, dimension_numbers=(((1,), (1,)), ((), ())),
        preferred_element_type=jnp.float32)                      # (1, TILE_C)
    inv_wnorm = lax.rsqrt(jnp.maximum(w_sumsq, jnp.float32(1e-24)))

    cosine = cos_raw * inv_wnorm                                 # (TILE_B, TILE_C)

    # ArcFace margin math (clamp so rounding can't push 1 - cos^2 below 0).
    sine = jnp.sqrt(jnp.clip(1.0 - cosine * cosine, 0.0, 1.0))
    phi = cosine * cos_m - sine * sin_m
    if easy_margin:
        phi = jnp.where(cosine > 0.0, phi, cosine)
    else:
        phi = jnp.where(cosine > th, phi, cosine - mm)

    # one_hot.scatter_(1, label, 1)  ->  global-column iota compare.
    col0 = pl.program_id(0) * tile_c
    cols = lax.broadcasted_iota(jnp.int32, cosine.shape, 1) + col0
    is_target = cols == labels                                   # (TILE_B, TILE_C)

    if ls_eps > 0.0:
        one_hot = (1.0 - ls_eps) * is_target.astype(jnp.float32) \
            + (ls_eps / num_classes)
        out = one_hot * phi + (1.0 - one_hot) * cosine
    else:
        out = jnp.where(is_target, phi, cosine)

    out = out * scale
    if mask_tail:
        # Never let the undefined tail of a partial weight tile reach HBM,
        # even though the boundary-block store is already masked.
        out = jnp.where(cols < num_classes, out, 0.0)
    out_ref[...] = out.astype(out_ref.dtype)


def arc_margin_product(x, weight, label, *, scale=30.0, margin=0.5,
                       easy_margin=False, ls_eps=0.0,
                       tile_c=4096, tile_b=128,
                       weight_dtype=jnp.bfloat16):
    """Pallas TPU implementation of ArcMarginProduct.forward.

    x:      (B, in_features)
    weight: (out_features, in_features); streamed as `weight_dtype`
            (bf16 default = half the HBM weight traffic; None keeps x/weight
            dtype as-is, jnp.float32 gives exact-math streaming)
    label:  (B,) integer class ids
    """
    B, D = x.shape
    C, D2 = weight.shape
    assert D == D2, "in_features mismatch between x and weight"

    # Normalize x once in f32 in the wrapper (tiny (B, D) op), then cast to
    # the streaming dtype so the MXU runs its native path.
    x32 = x.astype(jnp.float32)
    xn = x32 * lax.rsqrt(
        jnp.maximum(jnp.sum(x32 * x32, axis=-1, keepdims=True),
                    jnp.float32(1e-24)))

    w = weight if weight_dtype is None else weight.astype(weight_dtype)
    if w.dtype == jnp.bfloat16:
        xn = xn.astype(jnp.bfloat16)
    else:
        w = w.astype(jnp.float32)
        xn = xn.astype(jnp.float32)

    # ---- Class (lane) tiling: lane-dense multiple of 128, no padded weight
    # copy; the last tile is a partial boundary block.
    c_ceil128 = ((C + 127) // 128) * 128
    tile_c = max(128, (int(tile_c) // 128) * 128)
    tile_c = min(tile_c, c_ceil128)
    n_c = pl.cdiv(C, tile_c)
    # v7x megacore: prefer an even number of class tiles so the "parallel"
    # axis load-balances across the two TensorCores (best effort, one pass).
    if n_c > 1 and n_c % 2 == 1:
        tile_c = max(128, ((pl.cdiv(C, n_c + 1) + 127) // 128) * 128)
        n_c = pl.cdiv(C, tile_c)

    # ---- Batch (sublane) tiling: multiple of 8; batch is the INNER grid axis
    # and the weight index_map ignores it, so each W tile is DMA'd once.
    b_ceil8 = ((B + 7) // 8) * 8
    tile_b = max(8, (int(tile_b) // 8) * 8)
    tile_b = min(tile_b, b_ceil8)
    n_b = pl.cdiv(B, tile_b)

    label2d = label.reshape(B, 1).astype(jnp.int32)

    kernel = functools.partial(
        _arcmargin_kernel,
        scale=float(scale),
        cos_m=float(math.cos(margin)),
        sin_m=float(math.sin(margin)),
        th=float(math.cos(math.pi - margin)),
        mm=float(math.sin(math.pi - margin) * margin),
        easy_margin=bool(easy_margin),
        ls_eps=float(ls_eps),
        num_classes=int(C),
        tile_c=int(tile_c),
        mask_tail=bool(C % tile_c != 0),
    )

    grid_spec = pl.GridSpec(
        grid=(n_c, n_b),                                   # c outer, b inner
        in_specs=[
            pl.BlockSpec((tile_b, D), lambda ci, bi: (bi, 0)),    # xn
            pl.BlockSpec((tile_c, D), lambda ci, bi: (ci, 0)),    # W (resident over bi)
            pl.BlockSpec((tile_b, 1), lambda ci, bi: (bi, 0)),    # labels
        ],
        out_specs=pl.BlockSpec((tile_b, tile_c), lambda ci, bi: (bi, ci)),
    )

    # VMEM budget: double-buffered I/O plus headroom for f32 intermediates;
    # capped at 48 MiB so it also fits v7x's 64 MiB physical VMEM.
    io_bytes = 2 * (tile_c * D * w.dtype.itemsize
                    + tile_b * D * xn.dtype.itemsize
                    + tile_b * tile_c * 4
                    + tile_b * 128 * 4)
    tmp_bytes = 2 * tile_c * D * 4 + 6 * tile_b * tile_c * 4
    vmem_limit = int(min(max(io_bytes + tmp_bytes + (4 << 20), 32 << 20),
                         48 << 20))

    out = pl.pallas_call(
        kernel,
        out_shape=jax.ShapeDtypeStruct((B, C), jnp.float32),
        grid_spec=grid_spec,
        compiler_params=pltpu.CompilerParams(
            dimension_semantics=("parallel", "arbitrary"),
            vmem_limit_bytes=vmem_limit),
    )(xn, w, label2d)

    return out


def _reference(x, weight, label, *, scale=30.0, margin=0.5,
               easy_margin=False, ls_eps=0.0):
    """Pure-JAX reference mirroring the PyTorch forward (for verification)."""
    eps = 1e-12
    xn = x / jnp.maximum(jnp.linalg.norm(x, axis=1, keepdims=True), eps)
    wn = weight / jnp.maximum(jnp.linalg.norm(weight, axis=1, keepdims=True), eps)
    cosine = xn @ wn.T
    sine = jnp.sqrt(jnp.clip(1.0 - cosine ** 2, 0.0, 1.0))
    cos_m, sin_m = math.cos(margin), math.sin(margin)
    th = math.cos(math.pi - margin)
    mm = math.sin(math.pi - margin) * margin
    phi = cosine * cos_m - sine * sin_m
    if easy_margin:
        phi = jnp.where(cosine > 0, phi, cosine)
    else:
        phi = jnp.where(cosine > th, phi, cosine - mm)
    one_hot = jax.nn.one_hot(label, cosine.shape[1], dtype=jnp.float32)
    if ls_eps > 0:
        one_hot = (1 - ls_eps) * one_hot + ls_eps / cosine.shape[1]
    return (one_hot * phi + (1.0 - one_hot) * cosine) * scale


if __name__ == "__main__":
    key = jax.random.PRNGKey(0)
    k_x, k_w, k_l, k_x2, k_l2 = jax.random.split(key, 5)

    B = 8
    IN_FEATURES = 256
    OUT_FEATURES = 1000   # not a multiple of 128 -> exercises partial C tiles

    x = jax.random.normal(k_x, (B, IN_FEATURES), dtype=jnp.float32)
    # Deterministic Xavier-uniform init (matches nn.init.xavier_uniform_ bound).
    bound = math.sqrt(6.0 / (IN_FEATURES + OUT_FEATURES))
    weight = jax.random.uniform(k_w, (OUT_FEATURES, IN_FEATURES),
                                dtype=jnp.float32, minval=-bound, maxval=bound)
    label = jax.random.randint(k_l, (B,), 0, OUT_FEATURES, dtype=jnp.int32)

    ref = _reference(x, weight, label, scale=30.0, margin=0.5)

    # Case 1: f32 weight streaming, 2 class tiles (second one partial).
    out = arc_margin_product(x, weight, label, scale=30.0, margin=0.5,
                             weight_dtype=jnp.float32, tile_c=512)
    out = jax.block_until_ready(out)
    assert out.shape == (B, OUT_FEATURES)
    err = float(jnp.max(jnp.abs(out - ref)))
    assert jnp.allclose(out, ref, atol=1e-3, rtol=1e-3), f"f32 max abs err {err}"

    # Case 2: default fast path (bf16 weight streaming, f32 accumulation);
    # looser tolerance for bf16 rounding of the cosine.
    out_bf = arc_margin_product(x, weight, label, scale=30.0, margin=0.5)
    out_bf = jax.block_until_ready(out_bf)
    err_bf = float(jnp.max(jnp.abs(out_bf - ref)))
    assert jnp.allclose(out_bf, ref, atol=1.5e-1, rtol=1e-2), \
        f"bf16 max abs err {err_bf}"

    # Case 3: label smoothing + easy margin, 4 class tiles.
    ref3 = _reference(x, weight, label, scale=30.0, margin=0.5,
                      easy_margin=True, ls_eps=0.1)
    out3 = arc_margin_product(x, weight, label, scale=30.0, margin=0.5,
                              easy_margin=True, ls_eps=0.1,
                              weight_dtype=jnp.float32, tile_c=256)
    out3 = jax.block_until_ready(out3)
    err3 = float(jnp.max(jnp.abs(out3 - ref3)))
    assert jnp.allclose(out3, ref3, atol=1e-3, rtol=1e-3), f"ls max abs err {err3}"

    # Case 4: 2-D grid with batch tiling (partial batch boundary block);
    # W tile stays resident across the inner batch loop.
    B4 = 24
    x4 = jax.random.normal(k_x2, (B4, IN_FEATURES), dtype=jnp.float32)
    label4 = jax.random.randint(k_l2, (B4,), 0, OUT_FEATURES, dtype=jnp.int32)
    ref4 = _reference(x4, weight, label4, scale=30.0, margin=0.5)
    out4 = arc_margin_product(x4, weight, label4, scale=30.0, margin=0.5,
                              weight_dtype=jnp.float32, tile_c=384, tile_b=16)
    out4 = jax.block_until_ready(out4)
    assert out4.shape == (B4, OUT_FEATURES)
    err4 = float(jnp.max(jnp.abs(out4 - ref4)))
    assert jnp.allclose(out4, ref4, atol=1e-3, rtol=1e-3), f"2d max abs err {err4}"

    print("KERNEL_OK")
</pallas_src>

<mosaic_0001>
module attributes {stable_mosaic.version = 11 : i64} {
  func.func @_arcmargin_kernel(%arg0: i32, %arg1: i32, %arg2: memref<8x256xf32, #tpu.memory_space<vmem>>, %arg3: memref<512x256xf32, #tpu.memory_space<vmem>>, %arg4: memref<8x1xi32, #tpu.memory_space<vmem>>, %arg5: memref<8x512xf32, #tpu.memory_space<vmem>>) attributes {dimension_semantics = [#tpu.dimension_semantics<parallel>, #tpu.dimension_semantics<arbitrary>], iteration_bounds = array<i64: 2, 1>, scalar_prefetch = 0 : i64, scratch_operands = 0 : i64, tpu.core_type = #tpu.core_type<tc>, window_params = [{transform_indices = @transform_0, window_bounds = array<i64: 8, 256>}, {transform_indices = @transform_1, window_bounds = array<i64: 512, 256>}, {transform_indices = @transform_2, window_bounds = array<i64: 8, 1>}, {transform_indices = @transform_3, window_bounds = array<i64: 8, 512>}]} {
    %c0 = arith.constant 0 : index
    %c0_0 = arith.constant 0 : index
    %0 = vector.load %arg2[%c0, %c0_0] : memref<8x256xf32, #tpu.memory_space<vmem>>, vector<8x256xf32>
    %c0_1 = arith.constant 0 : index
    %c0_2 = arith.constant 0 : index
    %1 = vector.load %arg3[%c0_1, %c0_2] : memref<512x256xf32, #tpu.memory_space<vmem>>, vector<512x256xf32>
    %c0_3 = arith.constant 0 : index
    %c0_4 = arith.constant 0 : index
    %2 = vector.load %arg4[%c0_3, %c0_4] : memref<8x1xi32, #tpu.memory_space<vmem>>, vector<8x1xi32>
    %cst = arith.constant dense<0.000000e+00> : vector<8x512xf32>
    %3 = tpu.matmul %0, %1, %cst {dimension_numbers = #tpu.dot_dimension_numbers<[1], [1], [0], [0], [0, 0, 1, 0], [], []>} : vector<8x256xf32>, vector<512x256xf32>, vector<8x512xf32> -> vector<8x512xf32>
    %4 = arith.mulf %1, %1 : vector<512x256xf32>
    %cst_5 = arith.constant 1.000000e+00 : f32
    %5 = vector.broadcast %cst_5 : f32 to vector<1x256xf32>
    %cst_6 = arith.constant dense<0.000000e+00> : vector<1x512xf32>
    %6 = tpu.matmul %5, %4, %cst_6 {dimension_numbers = #tpu.dot_dimension_numbers<[1], [1], [0], [0], [0, 0, 1, 0], [], []>} : vector<1x256xf32>, vector<512x256xf32>, vector<1x512xf32> -> vector<1x512xf32>
    %cst_7 = arith.constant 1.000000e-24 : f32
    %7 = vector.broadcast %cst_7 : f32 to vector<1x512xf32>
    %8 = arith.maximumf %6, %7 : vector<1x512xf32>
    %9 = math.rsqrt %8 : vector<1x512xf32>
    %10 = vector.broadcast %9 : vector<1x512xf32> to vector<8x512xf32>
    %11 = arith.mulf %3, %10 : vector<8x512xf32>
    %12 = arith.mulf %11, %11 : vector<8x512xf32>
    %cst_8 = arith.constant 1.000000e+00 : f32
    %13 = vector.broadcast %cst_8 : f32 to vector<8x512xf32>
    %14 = arith.subf %13, %12 : vector<8x512xf32>
    %cst_9 = arith.constant 0.000000e+00 : f32
    %cst_10 = arith.constant 1.000000e+00 : f32
    %15 = vector.broadcast %cst_9 : f32 to vector<8x512xf32>
    %16 = arith.maximumf %15, %14 : vector<8x512xf32>
    %17 = vector.broadcast %cst_10 : f32 to vector<8x512xf32>
    %18 = arith.minimumf %17, %16 : vector<8x512xf32>
    %19 = math.sqrt %18 : vector<8x512xf32>
    %cst_11 = arith.constant 0.87758255 : f32
    %20 = vector.broadcast %cst_11 : f32 to vector<8x512xf32>
    %21 = arith.mulf %11, %20 : vector<8x512xf32>
    %cst_12 = arith.constant 0.47942555 : f32
    %22 = vector.broadcast %cst_12 : f32 to vector<8x512xf32>
    %23 = arith.mulf %19, %22 : vector<8x512xf32>
    %24 = arith.subf %21, %23 : vector<8x512xf32>
    %cst_13 = arith.constant -0.87758255 : f32
    %25 = vector.broadcast %cst_13 : f32 to vector<8x512xf32>
    %26 = arith.cmpf ogt, %11, %25 : vector<8x512xf32>
    %cst_14 = arith.constant 0.239712775 : f32
    %27 = vector.broadcast %cst_14 : f32 to vector<8x512xf32>
    %28 = arith.subf %11, %27 : vector<8x512xf32>
    %29 = arith.select %26, %24, %28 : vector<8x512xi1>, vector<8x512xf32>
    %c512_i32 = arith.constant 512 : i32
    %30 = arith.muli %arg0, %c512_i32 : i32
    %31 = tpu.iota {dimensions = array<i32: 1>} : vector<8x512xi32>
    %32 = vector.broadcast %30 : i32 to vector<8x512xi32>
    %33 = arith.addi %31, %32 : vector<8x512xi32>
    %34 = vector.broadcast %2 : vector<8x1xi32> to vector<8x512xi32>
    %35 = arith.cmpi eq, %33, %34 : vector<8x512xi32>
    %36 = arith.select %35, %29, %11 : vector<8x512xi1>, vector<8x512xf32>
    %cst_15 = arith.constant 3.000000e+01 : f32
    %37 = vector.broadcast %cst_15 : f32 to vector<8x512xf32>
    %38 = arith.mulf %36, %37 : vector<8x512xf32>
    %c1000_i32 = arith.constant 1000 : i32
    %39 = vector.broadcast %c1000_i32 : i32 to vector<8x512xi32>
    %40 = arith.cmpi slt, %33, %39 : vector<8x512xi32>
    %cst_16 = arith.constant 0.000000e+00 : f32
    %41 = vector.broadcast %cst_16 : f32 to vector<8x512xf32>
    %42 = arith.select %40, %38, %41 : vector<8x512xi1>, vector<8x512xf32>
    %c0_17 = arith.constant 0 : index
    %c0_18 = arith.constant 0 : index
    %43 = vector.load %arg5[%c0_17, %c0_18] : memref<8x512xf32, #tpu.memory_space<vmem>>, vector<8x512xf32>
    tpu.vector_store %arg5[%c0_17, %c0_18], %42 {strides = array<i32>} : memref<8x512xf32, #tpu.memory_space<vmem>>, vector<8x512xf32>,
    return
  }
  func.func @transform_0(%arg0: i32, %arg1: i32) -> (i32, i32) {
    %c0_i32 = arith.constant 0 : i32
    %c0_i32_0 = arith.constant 0 : i32
    return %arg1, %c0_i32 : i32, i32
  }
  func.func @transform_1(%arg0: i32, %arg1: i32) -> (i32, i32) {
    %c0_i32 = arith.constant 0 : i32
    %c0_i32_0 = arith.constant 0 : i32
    return %arg0, %c0_i32 : i32, i32
  }
  func.func @transform_2(%arg0: i32, %arg1: i32) -> (i32, i32) {
    %c0_i32 = arith.constant 0 : i32
    %c0_i32_0 = arith.constant 0 : i32
    return %arg1, %c0_i32 : i32, i32
  }
  func.func @transform_3(%arg0: i32, %arg1: i32) -> (i32, i32) {
    %c0_i32 = arith.constant 0 : i32
    return %arg1, %arg0 : i32, i32
  }
}

</mosaic_0001>

<bundles_post_ra>
// kernel: tpu_custom_call.1
= control target key start
LH: loop header
LB: loop body
LE: loop exit
PB: predicated region body
PF: predicated region fallthrough
CT: control target
= control target key end

     0   :  { %8 = vsyncpa [#allocation3], 0  ;;  %s2628_s0 = inlined_call_operand.hbm [shape: f32[8,256], index: 0, kind: input, shape index: {}]   ;;  %s2629_s1 = inlined_call_operand.hbm [shape: f32[1000,256], index: 1, kind: input, shape index: {}]   ;;  %s2630_s2 = inlined_call_operand.vmem [shape: s32[8,1], index: 2, kind: input, shape index: {}]   ;;  %s2631_s3 = inlined_call_operand.hbm [shape: f32[8,1000], index: 3, kind: output, shape index: {}]  }
   0x1   :  { %9 = vsyncpa [#allocation6], 0 }
   0x2   :  { %11 = vsyncpa [#allocation6 + $0x1], 0 }
   0x3   :  { %12 = vsyncpa [#allocation4], 0 }
   0x4   :  { %14 = vsyncpa [#allocation4 + $0x1], 0  ;;  %s1608_s12 = smov 0   ;;  %s1610_s13 = smov 0  }
   0x5   :  { %s1612_s14 = smov 0   ;;  %s1614_s15 = smov 0  }
   0x6   :  { %s1616_s16 = smov 0   ;;  %s1618_s17 = smov 0  }
   0x7 LB: > { %s1060_s18 = sadd.s32 4294967295, %s1579_s17   ;;  %s1061_s19 = sadd.s32 4294967294, %s1579_s17   ;;  %s1579_s17 = sphi %s1618_s17, %s20_s17   ;;  %s1575_s16 = sphi %s1616_s16, %s2940_s16   ;;  %s1571_s15 = sphi %s1614_s15, %s2939_s15   ;;  %s1567_s14 = sphi %s1612_s14, %s2938_s14   ;;  %s1563_s13 = sphi %s1610_s13, %s2937_s13   ;;  %s1559_s12 = sphi %s1608_s12, %s2936_s12  }
   0x8   : > { %s32_s20 = sadd.s32 1, %s1575_s16  ;;  %s65_s21 = sadd.s32 1, %s1567_s14 }
   0x9   : > { %p34_p0 = scmp.ge.s32.totalorder %s32_s20, 2  ;;  %p72_p1 = scmp.ne.s32.totalorder %s1567_s14, %s1563_s13 }
   0xa   : > { %p73_p2 = scmp.eq.s32.totalorder %s1579_s17, 0  ;;  %p78_p3 = scmp.ne.s32.totalorder %s1563_s13, %s1559_s12 }
   0xb   : > { %s2942_s20 = smov (%p34_p0, %s32_s20), 0  ;;  %p1653_p5 = scmp.eq.s32.totalorder %s1060_s18, 0 }
   0xc   : > { %p1649_p4 = por %p73_p2, %p72_p1  ;;  %s62_s24 = ssub.s32 %s1575_s16, %s2942_s20 }
   0xd   : > { %s2715_s23 = scalar_select %p1653_p5, 1, 0 }
   0xe   : > { %s2714_s22 = scalar_select %p1649_p4, 1, 0 }
   0xf   : > { %p130_p6 = scmp.eq.s32.totalorder %s1060_s18, 1  ;;  %p63_p7 = scmp.eq.s32.totalorder %s62_s24, 0 }
  0x10   : > { %p1661_p8 = por %p1653_p5, %p78_p3  ;;  %p136_p10 = scmp.eq.s32.totalorder %s1061_s19, 1 }
  0x11   : > { %p1665_p9 = por %p130_p6, %p72_p1  ;;  %p1062_p12 = scmp.ge.s32.totalorder %s1579_s17, 1 }
  0x12   : > { %s2716_s25 = scalar_select %p1661_p8, 1, 0 }
  0x13   : > { %s2717_s26 = scalar_select %p1665_p9, 1, 0 }
  0x14   : > { %s1670_s27 = scalar_select %p63_p7, %s1567_s14, %s65_s21  }
  0x15   : > { %p1672_p11 = por %p136_p10, %p78_p3  ;;  %p143_p13 = scmp.lt.s32.totalorder %s1579_s17, 3 }
  0x16   : > { %s1581_s30 = smov [#allocation2]   ;;  %s1437_s8 = scalar_lea.hbm %s2628_s0, 256 }
  0x17   : > { %s2718_s28 = scalar_select %p1672_p11, 1, 0 }
  0x18   : > { %p1678_p0 = pnand %p1062_p12, %p143_p13  ;;  %s159_s4 = sshll.u32 %s1581_s30, 4  ;;  %s160_s4 = int_to_ptr.vmem [resolvable:$true] %s159_s4 }
  0x19   : > { %p1438_p3 = scmp.ne.s32.totalorder %s2628_s0, %s1437_s8  ;;  %p1444_p12 = scmp.lt.u32.totalorder %s1437_s8, %s2628_s0 }
  0x1a   : > { %s2719_s29 = scalar_select %p1678_p0, 1, 0 }
  0x1b   : > { %p1356_p1 = pneg %p1678_p0 }
  0x1d   : > { %p1686_p2 = pnand %p1356_p1, %p1653_p5 }
  0x1f   : > { %p1439_p6 = pneg %p1686_p2 }
  0x21   : > { %p1440_p7 = pnand %p1439_p6, %p1438_p3 }
  0x23   : > { %p1441_p10 = pneg %p1440_p7 }
  0x25   : > { %p1446_p13 = pnand %p1444_p12, %p1441_p10 }
  0x27   : > { %1449 = shalt.err (!%p1446_p13)
}
  0x28   : > { %s1450_s19 = scalar_lea.vmem %s160_s4, 256  ;;  %p1458_p8 = scmp.lt.s32.totalorder %s160_s4, %s160_s4 }
  0x29   : > { %p1451_p1 = scmp.ne.s32.totalorder %s160_s4, %s1450_s19  ;;  %p1459_p5 = scmp.lt.s32.totalorder %s1450_s19, %s1450_s19 }
  0x2b   : > { %p1453_p11 = pnand %p1451_p1, %p1439_p6  ;;  %p1460_p0 = por %p1459_p5, %p1458_p8 }
  0x2d   : > { %p1454_p9 = pneg %p1453_p11 }
  0x2f   : > { %p1461_p4 = pnand %p1460_p0, %p1454_p9 }
  0x31   : > { %1464 = shalt.err (!%p1461_p4)
}
  0x32   : > { %1359 = dma.hbm_to_vmem [thread:$0]  (!%p1686_p2), %s2628_s0, 256, %s160_s4, [#allocation3]  }
  0x33   : > { %p1065_p3 = scmp.ge.s32.totalorder %s1579_s17, 2 }
  0x34   : > { %p2721_p7 = scmp.ne.s32.totalorder (!%p1065_p3), %s2714_s22, 0 }
  0x35   : > { %173 = sbr.rel (%p1065_p3) target bundleno = 95 (0x5f), region = 24 }
  0x3c   : > { %176 = sbr.rel (!%p2721_p7) target bundleno = 95 (0x5f), region = 28  ;;  %s177_s30 = sand.u32 (%p2721_p7), 1, %s1567_s14  }
  0x3d   : > { %s1067_s6 = sshll.u32 (%p2721_p7), %s1575_s16, 6  ;;  %s1066_s7 = sshll.u32 (%p2721_p7), %s177_s30, 10 }
  0x3e   : > { %s183_s8 = ssub.s32 (%p2721_p7), 125, %s1067_s6  ;;  %s1716_s9 = scalar_lea.sflag (%p2721_p7), [#allocation6], %s177_s30 }
  0x3f   : > { %p184_p4 = scmp.lt.s32.totalorder (%p2721_p7), %s183_s8, 64  ;;  %s181_s10 = scalar_lea.vmem (%p2721_p7), [#allocation5], %s1066_s7 }
  0x43   : > { %s2944_s8 = smov (!%p184_p4, %s183_s8), 64 }
  0x44   : > { %s1713_s5 = sshll.u32 %s2944_s8, 8 }
  0x45   : > { %s189_s4 = ssub.s32 16384, %s1713_s5 }
  0x46   : > { %190 = vsyncadd %s1716_s9, %s189_s4  ;;  %p1070_p5 = scmp.ne.s32.totalorder %s1713_s5, 0  ;;  %s1091_s22 = sshll.u32 %s1575_s16, 14 }
  0x47   : > { %s1724_s19 = scalar_lea.hbm %s2629_s1, %s1091_s22  ;;  %s196_s21 = sshll.u32 %s181_s10, 4  ;;  %s1726_s21 = int_to_ptr.vmem [resolvable:$true] %s196_s21 }
  0x48   : > { %s1465_s24 = scalar_lea.hbm %s1724_s19, %s1713_s5  ;;  %s1469_s7 = scalar_lea.hbm %s2629_s1, 32000 }
  0x49   : > { %p1466_p8 = scmp.ne.s32.totalorder %s1724_s19, %s1465_s24  ;;  %p1470_p0 = scmp.lt.u32.totalorder %s1724_s19, %s2629_s1 }
  0x4a   : > { %p1471_p2 = scmp.lt.u32.totalorder %s1469_s7, %s1465_s24  ;;  %p1473_p10 = scmp.lt.u32.totalorder %s1465_s24, %s1724_s19 }
  0x4b   : > { %p1467_p9 = pnand %p1466_p8, %p1070_p5 }
  0x4c   : > { %p1472_p6 = por %p1471_p2, %p1470_p0 }
  0x4d   : > { %p1468_p11 = pneg %p1467_p9 }
  0x4e   : > { %p1474_p12 = por %p1473_p10, %p1472_p6 }
  0x50   : > { %p1475_p13 = pnand %p1474_p12, %p1468_p11 }
  0x52   : > { %1478 = shalt.err (!%p1475_p13)
}
  0x53   : > { %s1479_s10 = scalar_lea.vmem %s1726_s21, %s1713_s5  ;;  %s1582_s22 = smov [#allocation5]  }
  0x54   : > { %p1480_p1 = scmp.ne.s32.totalorder %s1726_s21, %s1479_s10  ;;  %s1483_s11 = sshll.u32 %s1582_s22, 4  ;;  %s1484_s11 = int_to_ptr.vmem [resolvable:$false] %s1483_s11 }
  0x55   : > { %s1485_s18 = scalar_lea.vmem %s1484_s11, 32768  ;;  %p1486_p8 = scmp.lt.s32.totalorder %s1726_s21, %s1484_s11 }
  0x56   : > { %p1481_p7 = pnand %p1480_p1, %p1070_p5  ;;  %p1487_p9 = scmp.lt.s32.totalorder %s1485_s18, %s1479_s10 }
  0x58   : > { %p1482_p4 = pneg %p1481_p7  ;;  %p1488_p0 = por %p1487_p9, %p1486_p8 }
  0x5a   : > { %p1489_p2 = pnand %p1488_p0, %p1482_p4 }
  0x5c   : > { %1492 = shalt.err (!%p1489_p2)
}
  0x5d   : > { %s1583_s24 = smov 256   ;;  %s1584_s30 = smov 16  }
  0x5e   : > { %202 = dma.hbm_to_vmem [thread:$0]  (%p1070_p5), %s1724_s19, %s1713_s5, %s1726_s21, %s1716_s9, %s1583_s24, %s1583_s24, %s1584_s30  }
  0x5f PF: > { %p2722_p11 = scmp.ne.s32.totalorder %s2719_s29, 0 }
  0x61   : > { %208 = sbr.rel (%p2722_p11) target bundleno = 649 (0x289), region = 32 }
  0x68   : > { %p2723_p6 = scmp.ne.s32.totalorder %s2715_s23, 0 }
  0x6a   : > { %1546 = dma.done.wait (%p2723_p6), [#allocation3], 256  }
  0x6b   : > { %1548 = vsyncadd (%p2723_p6), [#allocation3], 4294967040  ;;  %s1760_s6 = sand.u32 1, %s1563_s13   ;;  %p2724_p5 = scmp.ne.s32.totalorder %s2716_s25, 0 }
  0x6c   : > { %s1077_s7 = sshll.u32 %s1760_s6, 10  ;;  %s215_s8 = scalar_lea.sflag [#allocation6], %s1760_s6 }
  0x6d   : > { %s1764_s5 = scalar_lea.vmem [#allocation5], %s1077_s7 }
  0x6e   : > { %1550 = dma.done.wait (%p2724_p5), %s215_s8, 16384  }
  0x6f   : > { %1552 = vsyncadd (%p2724_p5), %s215_s8, 4294950912  ;;  %v259_v0 = vld [vmem:[%s1764_s5 + $0x8] sm:$0xff]  ;;  %v261_v1 = vld [vmem:[%s1764_s5 + $0x18] sm:$0xff]  ;;  %s1083_s29 = sshll.u32 %s1571_s15, 9  ;;  %s1078_s9 = sshll.u32 %s1760_s6, 5 }
  0x70   : > { %v323_v2 = vld [vmem:[%s1764_s5 + $0x208] sm:$0xff]  ;;  %v1093_v3 = vpack.c.bf16 %v261_v1, %v259_v0  ;;  %v1773_v4 = vmul.f32 %v259_v0, %v259_v0  ;;  %v1775_v5 = vmul.f32 %v261_v1, %v261_v1  ;;  %v325_v6 = vld [vmem:[%s1764_s5 + $0x218] sm:$0xff]  ;;  %v258_v7 = vld [vmem:[%s1764_s5] sm:$0xff]  ;;  %s244_s19 = scalar_lea.vmem [#allocation7], %s1078_s9  ;;  %s2577_s22 = scalar_lea.hbm %s2631_s3, %s1083_s29 }
  0x71   : > { %v260_v8 = vld [vmem:[%s1764_s5 + $0x10] sm:$0xff]  ;;  %v1157_v9 = vpack.c.bf16 %v325_v6, %v323_v2  ;;  %v1780_v11 = vmul.f32 %v258_v7, %v258_v7  ;;  %v322_v12 = vld [vmem:[%s1764_s5 + $0x200] sm:$0xff]  ;;  %v263_v14 = vld [vmem:[%s1764_s5 + $0x28] sm:$0xff]  ;;  %v1796_v25 = vmul.f32 %v323_v2, %v323_v2  ;;  %v1798_v26 = vmul.f32 %v325_v6, %v325_v6  ;;  %s950_s21 = sshll.u32 %s244_s19, 4  ;;  %s934_s15 = scalar_lea.sflag [#allocation4], %s1760_s6  ;;  %s2581_s21 = int_to_ptr.vmem [resolvable:$true] %s950_s21 }
  0x72   : > { %v1095_v10 = vpack.c.bf16 %v260_v8, %v258_v7  ;;  %v324_v13 = vld [vmem:[%s1764_s5 + $0x210] sm:$0xff]  ;;  %1094 = vmatprep.subr.bf16.mxu0 %v1093_v3  ;;  %v1785_v15 = vmul.f32 %v260_v8, %v260_v8  ;;  %v1787_v17 = vmul.f32 %v322_v12, %v322_v12  ;;  %v265_v19 = vld [vmem:[%s1764_s5 + $0x38] sm:$0xff]  ;;  %v327_v20 = vld [vmem:[%s1764_s5 + $0x228] sm:$0xff]  ;;  %v1814_v42 = vmul.f32 %v263_v14, %v263_v14  ;;  %s1493_s11 = scalar_lea.vmem %s2581_s21, 512  ;;  %p2934_p12 = scmp.ne.s32.totalorder %s2717_s26, 0 }
  0x73   : > { %v1159_v16 = vpack.c.bf16 %v324_v13, %v322_v12  ;;  %v1789_v18 = vmul.f32 %v324_v13, %v324_v13  ;;  %v329_v21 = vld [vmem:[%s1764_s5 + $0x238] sm:$0xff]  ;;  %1158 = vmatprep.subr.bf16.mxu1 %v1157_v9  ;;  %v1097_v22 = vpack.c.bf16 %v265_v19, %v263_v14  ;;  %v262_v29 = vld [vmem:[%s1764_s5 + $0x20] sm:$0xff]  ;;  %v264_v30 = vld [vmem:[%s1764_s5 + $0x30] sm:$0xff]  ;;  %v1816_v43 = vmul.f32 %v265_v19, %v265_v19  ;;  %p1494_p10 = scmp.ne.s32.totalorder %s2581_s21, %s1493_s11  ;;  %s1587_s18 = smov [#allocation7]  }
  0x74   : > { %1096 = vmatpush1.bf16.xpose.msra.mxu0 %v1095_v10  ;;  %v1161_v23 = vpack.c.bf16 %v329_v21, %v327_v20  ;;  %v326_v31 = vld [vmem:[%s1764_s5 + $0x220] sm:$0xff]  ;;  %v328_v32 = vld [vmem:[%s1764_s5 + $0x230] sm:$0xff]  ;;  %v267_v33 = vld [vmem:[%s1764_s5 + $0x48] sm:$0xff]  ;;  %v1099_v37 = vpack.c.bf16 %v264_v30, %v262_v29  ;;  %v1818_v44 = vmul.f32 %v262_v29, %v262_v29  ;;  %v1820_v45 = vmul.f32 %v327_v20, %v327_v20  ;;  %s1497_s24 = sshll.u32 %s1587_s18, 4  ;;  %s1498_s24 = int_to_ptr.vmem [resolvable:$false] %s1497_s24 }
  0x75   : > { %1160 = vmatpush1.bf16.xpose.msra.mxu1 %v1159_v16  ;;  %1098 = vmatprep.subr.bf16.mxu0 %v1097_v22  ;;  %v269_v34 = vld [vmem:[%s1764_s5 + $0x58] sm:$0xff]  ;;  %v331_v35 = vld [vmem:[%s1764_s5 + $0x248] sm:$0xff]  ;;  %v1163_v38 = vpack.c.bf16 %v328_v32, %v326_v31  ;;  %v1822_v46 = vmul.f32 %v329_v21, %v329_v21  ;;  %v1824_v47 = vmul.f32 %v264_v30, %v264_v30  ;;  %v266_v50 = vld [vmem:[%s1764_s5 + $0x40] sm:$0xff]  ;;  %p1495_p13 = pnand %p1494_p10, %p2934_p12  ;;  %s1499_s30 = scalar_lea.vmem %s1498_s24, 1024 }
  0x76   : > { %1162 = vmatprep.subr.bf16.mxu1 %v1161_v23  ;;  %v333_v36 = vld [vmem:[%s1764_s5 + $0x258] sm:$0xff]  ;;  %v1101_v39 = vpack.c.bf16 %v269_v34, %v267_v33  ;;  %v1826_v48 = vmul.f32 %v326_v31, %v326_v31  ;;  %v1828_v49 = vmul.f32 %v328_v32, %v328_v32  ;;  %v268_v51 = vld [vmem:[%s1764_s5 + $0x50] sm:$0xff]  ;;  %v330_v52 = vld [vmem:[%s1764_s5 + $0x240] sm:$0xff]  ;;  %v1846_v2 = vmul.f32 %v267_v33, %v267_v33  ;;  %p1500_p7 = scmp.lt.s32.totalorder %s2581_s21, %s1498_s24  ;;  %p1501_p4 = scmp.lt.s32.totalorder %s1499_s30, %s1493_s11 }
  0x77   : > { %v1165_v41 = vpack.c.bf16 %v333_v36, %v331_v35  ;;  %v332_v53 = vld [vmem:[%s1764_s5 + $0x250] sm:$0xff]  ;;  %v271_v54 = vld [vmem:[%s1764_s5 + $0x68] sm:$0xff]  ;;  %v273_v55 = vld [vmem:[%s1764_s5 + $0x78] sm:$0xff]  ;;  %v1103_v60 = vpack.c.bf16 %v268_v51, %v266_v50  ;;  %v1848_v3 = vmul.f32 %v269_v34, %v269_v34  ;;  %v1850_v6 = vmul.f32 %v266_v50, %v266_v50  ;;  %p1496_p1 = pneg %p1495_p13 }
  0x78   : > { %v335_v56 = vld [vmem:[%s1764_s5 + $0x268] sm:$0xff]  ;;  %v337_v57 = vld [vmem:[%s1764_s5 + $0x278] sm:$0xff]  ;;  %v1167_v61 = vpack.c.bf16 %v332_v53, %v330_v52  ;;  %v1105_v62 = vpack.c.bf16 %v273_v55, %v271_v54  ;;  %v1852_v7 = vmul.f32 %v268_v51, %v268_v51  ;;  %v270_v8 = vld [vmem:[%s1764_s5 + $0x60] sm:$0xff]  ;;  %v1857_v12 = vmul.f32 %v331_v35, %v331_v35  ;;  %p1502_p8 = por %p1501_p4, %p1500_p7 }
  0x79   : > { %v1169_v1 = vpack.c.bf16 %v337_v57, %v335_v56  ;;  %v272_v9 = vld [vmem:[%s1764_s5 + $0x70] sm:$0xff]  ;;  %v334_v10 = vld [vmem:[%s1764_s5 + $0x260] sm:$0xff]  ;;  %v275_v14 = vld [vmem:[%s1764_s5 + $0x88] sm:$0xff]  ;;  %v1862_v19 = vmul.f32 %v330_v52, %v330_v52  ;;  %v1864_v20 = vmul.f32 %v332_v53, %v332_v53  ;;  %v1872_v29 = vmul.f32 %v333_v36, %v333_v36 }
  0x7a   : > { %v336_v13 = vld [vmem:[%s1764_s5 + $0x270] sm:$0xff]  ;;  %v277_v16 = vld [vmem:[%s1764_s5 + $0x98] sm:$0xff]  ;;  %v339_v21 = vld [vmem:[%s1764_s5 + $0x288] sm:$0xff]  ;;  %v1107_v30 = vpack.c.bf16 %v272_v9, %v270_v8  ;;  %v1916_v33 = vmul.f32 %v275_v14, %v275_v14  ;;  %p1503_p9 = pnand %p1502_p8, %p1496_p1 }
  0x7b   : > { %v1868_v22 = vld [vmem:[%s1764_s5 + $0x298] sm:$0xff]  ;;  %v1171_v31 = vpack.c.bf16 %v336_v13, %v334_v10  ;;  %v1109_v32 = vpack.c.bf16 %v277_v16, %v275_v14  ;;  %v274_v50 = vld [vmem:[%s1764_s5 + $0x80] sm:$0xff]  ;;  %v276_v51 = vld [vmem:[%s1764_s5 + $0x90] sm:$0xff]  ;;  %v1931_v59 = vmul.f32 %v277_v16, %v277_v16  ;;  %v1937_v58 = vmul.f32 %v339_v21, %v339_v21 }
  0x7c   : > { %1100 = vmatpush1.bf16.xpose.msra.mxu0 %v1099_v37  ;;  %v1173_v35 = vpack.c.bf16 %v1868_v22, %v339_v21  ;;  %v1881_v37 = vmul.f32 %v271_v54, %v271_v54  ;;  %v338_v52 = vld [vmem:[%s1764_s5 + $0x280] sm:$0xff]  ;;  %v340_v53 = vld [vmem:[%s1764_s5 + $0x290] sm:$0xff]  ;;  %2730 = vst [vmem:[#allocation16_spill] sm:$0xff] %v1916_v33  ;;  %v1918_v23 = vmul.f32 %v274_v50, %v274_v50 }
  0x7d   : > { %1164 = vmatpush1.bf16.xpose.msra.mxu1 %v1163_v38  ;;  %1102 = vmatprep.subr.bf16.mxu0 %v1101_v39  ;;  %v1883_v38 = vmul.f32 %v273_v55, %v273_v55  ;;  %v1885_v39 = vmul.f32 %v270_v8, %v270_v8  ;;  %v1899_v55 = vmul.f32 %v335_v56, %v335_v56  ;;  %v280_v34 = vld [vmem:[%s1764_s5 + $0xb0] sm:$0xff]  ;;  %v283_v56 = vld [vmem:[%s1764_s5 + $0xc8] sm:$0xff]  ;;  %v282_v27 = vld [vmem:[%s1764_s5 + $0xc0] sm:$0xff] }
  0x7e   : > { %1166 = vmatprep.subr.bf16.mxu1 %v1165_v41  ;;  %v1887_v41 = vmul.f32 %v272_v9, %v272_v9  ;;  %v1901_v8 = vmul.f32 %v334_v10, %v334_v10  ;;  %v1903_v9 = vmul.f32 %v336_v13, %v336_v13  ;;  %v278_v13 = vld [vmem:[%s1764_s5 + $0xa0] sm:$0xff]  ;;  %v344_v36 = vld [vmem:[%s1764_s5 + $0x2b0] sm:$0xff]  ;;  %v1923_v0 = vmul.f32 %v276_v51, %v276_v51 }
  0x7f   : > { %2725 = vst [vmem:[#allocation11_spill] sm:$0xff] %v1885_v39  ;;  %2727 = vst [vmem:[#allocation13_spill] sm:$0xff] %v1899_v55  ;;  %v1925_v63 = vmul.f32 %v338_v52, %v338_v52  ;;  %v1927_v10 = vmul.f32 %v340_v53, %v340_v53  ;;  %v1115_v14 = vpack.c.bf16 %v280_v34, %v278_v13  ;;  %v346_v21 = vld [vmem:[%s1764_s5 + $0x2c0] sm:$0xff] }
  0x80   : > { %2726 = vst [vmem:[#allocation12_spill] sm:$0xff] %v1887_v41  ;;  %2728 = vst [vmem:[#allocation14_spill] sm:$0xff] %v1901_v8  ;;  %v1945_v40 = vmul.f32 %v1868_v22, %v1868_v22  ;;  %v1949_v24 = vmul.f32 %v344_v36, %v344_v36  ;;  %v348_v8 = vld [vmem:[%s1764_s5 + $0x2d0] sm:$0xff]  ;;  %v1957_v41 = vmul.f32 %v346_v21, %v346_v21  ;;  %v289_v22 = vld [vmem:[%s1764_s5 + $0xf8] sm:$0xff] }
  0x81   : > { %2729 = vst [vmem:[#allocation15_spill] sm:$0xff] %v1903_v9  ;;  %2731 = vst [vmem:[#allocation17_spill] sm:$0xff] %v1925_v63  ;;  %v257_v9 = vld [vmem:[#allocation2 + $0x8] sm:$0xff] }
  0x82   : > { %2732 = vst [vmem:[#allocation18_spill] sm:$0xff] %v1931_v59  ;;  %2734 = vst [vmem:[#allocation20_spill] sm:$0xff] %v1949_v24  ;;  %451 = vmatprep.mubr.f32.mxu0 %v257_v9  ;;  %522 = vmatprep.mubr.f32.mxu1 %v257_v9  ;;  %v286_v24 = vld [vmem:[%s1764_s5 + $0xe0] sm:$0xff] }
  0x83   : > { %2737 = vst [vmem:[#allocation23_spill] sm:$0xff] %v1957_v41 }
  0x84   : > { %1104 = vmatpush1.bf16.xpose.msra.mxu0 %v1103_v60  ;;  %v279_v60 = vld [vmem:[%s1764_s5 + $0xa8] sm:$0xff] }
  0x85   : > { %1168 = vmatpush1.bf16.xpose.msra.mxu1 %v1167_v61  ;;  %1106 = vmatprep.subr.bf16.mxu0 %v1105_v62  ;;  %v281_v61 = vld [vmem:[%s1764_s5 + $0xb8] sm:$0xff]  ;;  %v343_v62 = vld [vmem:[%s1764_s5 + $0x2a8] sm:$0xff]  ;;  %v1967_v33 = vmul.f32 %v279_v60, %v279_v60 }
  0x86   : > { %1170 = vmatprep.subr.bf16.mxu1 %v1169_v1  ;;  %v345_v1 = vld [vmem:[%s1764_s5 + $0x2b8] sm:$0xff]  ;;  %v1969_v59 = vmul.f32 %v281_v61, %v281_v61  ;;  %v1971_v55 = vmul.f32 %v343_v62, %v343_v62 }
  0x87   : > { %v1177_v54 = vpack.c.bf16 %v345_v1, %v343_v62  ;;  %v1973_v9 = vmul.f32 %v345_v1, %v345_v1  ;;  %v353_v62 = vld [vmem:[%s1764_s5 + $0x2f8] sm:$0xff]  ;;  %v288_v1 = vld [vmem:[%s1764_s5 + $0xf0] sm:$0xff] }
  0x8c   : > { %1108 = vmatpush1.bf16.xpose.msra.mxu0 %v1107_v30  ;;  %v1111_v30 = vpack.c.bf16 %v276_v51, %v274_v50  ;;  %v1933_v50 = vmul.f32 %v278_v13, %v278_v13 }
  0x8d   : > { %1172 = vmatpush1.bf16.xpose.msra.mxu1 %v1171_v31  ;;  %1110 = vmatprep.subr.bf16.mxu0 %v1109_v32  ;;  %v1175_v31 = vpack.c.bf16 %v340_v53, %v338_v52  ;;  %v1113_v32 = vpack.c.bf16 %v281_v61, %v279_v60  ;;  %v284_v52 = vld [vmem:[%s1764_s5 + $0xd0] sm:$0xff]  ;;  %v1959_v53 = vmul.f32 %v348_v8, %v348_v8  ;;  %v351_v61 = vld [vmem:[%s1764_s5 + $0x2e8] sm:$0xff] }
  0x8e   : > { %1174 = vmatprep.subr.bf16.mxu1 %v1173_v35  ;;  %v1905_v35 = vmul.f32 %v337_v57, %v337_v57  ;;  %v342_v57 = vld [vmem:[%s1764_s5 + $0x2a0] sm:$0xff]  ;;  %v1955_v39 = vmul.f32 %v284_v52, %v284_v52  ;;  %v1183_v60 = vpack.c.bf16 %v348_v8, %v346_v21 }
  0x8f   : > { %v1179_v28 = vpack.c.bf16 %v344_v36, %v342_v57  ;;  %v1947_v16 = vmul.f32 %v342_v57, %v342_v57  ;;  %2738 = vst [vmem:[#allocation24_spill] sm:$0xff] %v1959_v53  ;;  %v1981_v57 = vmul.f32 %v283_v56, %v283_v56  ;;  %v1119_v36 = vpack.c.bf16 %v284_v52, %v282_v27  ;;  %v350_v8 = vld [vmem:[%s1764_s5 + $0x2e0] sm:$0xff]  ;;  %v356_v52 = vld [vmem:[%s1764_s5 + $0x310] sm:$0xff] }
  0x90   : > { %2736 = vst [vmem:[#allocation22_spill] sm:$0xff] %v1955_v39  ;;  %v293_v39 = vld [vmem:[%s1764_s5 + $0x118] sm:$0xff]  ;;  %v290_v53 = vld [vmem:[%s1764_s5 + $0x100] sm:$0xff] }
  0x91   : > { %2733 = vst [vmem:[#allocation19_spill] sm:$0xff] %v1947_v16  ;;  %2739 = vst [vmem:[#allocation25_spill] sm:$0xff] %v1981_v57  ;;  %v360_v57 = vld [vmem:[%s1764_s5 + $0x330] sm:$0xff] }
  0x94   : > { %1112 = vmatpush1.bf16.xpose.msra.mxu0 %v1111_v30  ;;  %v285_v30 = vld [vmem:[%s1764_s5 + $0xd8] sm:$0xff] }
  0x95   : > { %1176 = vmatpush1.bf16.xpose.msra.mxu1 %v1175_v31  ;;  %1114 = vmatprep.subr.bf16.mxu0 %v1113_v32  ;;  %v347_v31 = vld [vmem:[%s1764_s5 + $0x2c8] sm:$0xff]  ;;  %v349_v32 = vld [vmem:[%s1764_s5 + $0x2d8] sm:$0xff]  ;;  %v1117_v51 = vpack.c.bf16 %v285_v30, %v283_v56  ;;  %v2014_v56 = vmul.f32 %v351_v61, %v351_v61 }
  0x96   : > { %1178 = vmatprep.subr.bf16.mxu1 %v1177_v54  ;;  %v1935_v54 = vmul.f32 %v280_v34, %v280_v34  ;;  %v1181_v13 = vpack.c.bf16 %v349_v32, %v347_v31  ;;  %v1951_v34 = vmul.f32 %v282_v27, %v282_v27  ;;  %v1993_v63 = vmul.f32 %v349_v32, %v349_v32 }
  0x97   : > { %v1185_v32 = vpack.c.bf16 %v353_v62, %v351_v61  ;;  %v2005_v27 = vmul.f32 %v288_v1, %v288_v1  ;;  %2746 = vst [vmem:[#allocation32_spill] sm:$0xff] %v2014_v56  ;;  %v295_v61 = vld [vmem:[%s1764_s5 + $0x128] sm:$0xff]  ;;  %v297_v56 = vld [vmem:[%s1764_s5 + $0x138] sm:$0xff] }
  0x98   : > { %2735 = vst [vmem:[#allocation21_spill] sm:$0xff] %v1951_v34  ;;  %2741 = vst [vmem:[#allocation27_spill] sm:$0xff] %v1993_v63  ;;  %v291_v34 = vld [vmem:[%s1764_s5 + $0x108] sm:$0xff] }
  0x99   : > { %2743 = vst [vmem:[#allocation29_spill] sm:$0xff] %v2005_v27  ;;  %v2035_v27 = vmul.f32 %v290_v53, %v290_v53 }
  0x9b   : > { %2750 = vst [vmem:[#allocation36_spill] sm:$0xff] %v2035_v27 }
  0x9c   : > { %1116 = vmatpush1.bf16.xpose.msra.mxu0 %v1115_v14  ;;  %v287_v14 = vld [vmem:[%s1764_s5 + $0xe8] sm:$0xff] }
  0x9d   : > { %1180 = vmatpush1.bf16.xpose.msra.mxu1 %v1179_v28  ;;  %1118 = vmatprep.subr.bf16.mxu0 %v1117_v51  ;;  %v1983_v28 = vmul.f32 %v285_v30, %v285_v30  ;;  %v1121_v16 = vpack.c.bf16 %v289_v22, %v287_v14  ;;  %v2003_v51 = vmul.f32 %v286_v24, %v286_v24 }
  0x9e   : > { %1182 = vmatprep.subr.bf16.mxu1 %v1181_v13  ;;  %v1991_v13 = vmul.f32 %v347_v31, %v347_v31  ;;  %v2010_v21 = vmul.f32 %v287_v14, %v287_v14  ;;  %v2012_v30 = vmul.f32 %v289_v22, %v289_v22  ;;  %v352_v31 = vld [vmem:[%s1764_s5 + $0x2f0] sm:$0xff]  ;;  %v355_v14 = vld [vmem:[%s1764_s5 + $0x308] sm:$0xff]  ;;  %v357_v22 = vld [vmem:[%s1764_s5 + $0x318] sm:$0xff] }
  0x9f   : > { %2742 = vst [vmem:[#allocation28_spill] sm:$0xff] %v2003_v51  ;;  %v1187_v41 = vpack.c.bf16 %v352_v31, %v350_v8  ;;  %v1189_v51 = vpack.c.bf16 %v357_v22, %v355_v14 }
  0xa0   : > { %2740 = vst [vmem:[#allocation26_spill] sm:$0xff] %v1991_v13  ;;  %2744 = vst [vmem:[#allocation30_spill] sm:$0xff] %v2010_v21  ;;  %v2019_v13 = vmul.f32 %v353_v62, %v353_v62  ;;  %v1125_v62 = vpack.c.bf16 %v293_v39, %v291_v34 }
  0xa1   : > { %2745 = vst [vmem:[#allocation31_spill] sm:$0xff] %v2012_v30  ;;  %v364_v30 = vld [vmem:[%s1764_s5 + $0x350] sm:$0xff] }
  0xa2   : > { %2747 = vst [vmem:[#allocation33_spill] sm:$0xff] %v2019_v13  ;;  %v2051_v13 = vmul.f32 %v357_v22, %v357_v22  ;;  %v1129_v22 = vpack.c.bf16 %v297_v56, %v295_v61 }
  0xa4   : > { %1120 = vmatpush1.bf16.xpose.msra.mxu0 %v1119_v36  ;;  %v292_v36 = vld [vmem:[%s1764_s5 + $0x110] sm:$0xff]  ;;  %2755 = vst [vmem:[#allocation41_spill] sm:$0xff] %v2051_v13 }
  0xa5   : > { %1184 = vmatpush1.bf16.xpose.msra.mxu1 %v1183_v60  ;;  %1122 = vmatprep.subr.bf16.mxu0 %v1121_v16  ;;  %v2023_v60 = vmul.f32 %v350_v8, %v350_v8  ;;  %v2025_v16 = vmul.f32 %v352_v31, %v352_v31  ;;  %v2037_v63 = vmul.f32 %v292_v36, %v292_v36 }
  0xa6   : > { %1186 = vmatprep.subr.bf16.mxu1 %v1185_v32  ;;  %v1123_v32 = vpack.c.bf16 %v288_v1, %v286_v24  ;;  %v354_v24 = vld [vmem:[%s1764_s5 + $0x300] sm:$0xff]  ;;  %v2042_v1 = vmul.f32 %v291_v34, %v291_v34  ;;  %v2044_v31 = vmul.f32 %v293_v39, %v293_v39  ;;  %v2046_v8 = vmul.f32 %v355_v14, %v355_v14  ;;  %v359_v34 = vld [vmem:[%s1764_s5 + $0x328] sm:$0xff]  ;;  %v361_v39 = vld [vmem:[%s1764_s5 + $0x338] sm:$0xff] }
  0xa7   : > { %2748 = vst [vmem:[#allocation34_spill] sm:$0xff] %v2023_v60  ;;  %2749 = vst [vmem:[#allocation35_spill] sm:$0xff] %v2025_v16  ;;  %v1191_v60 = vpack.c.bf16 %v356_v52, %v354_v24  ;;  %v294_v16 = vld [vmem:[%s1764_s5 + $0x120] sm:$0xff]  ;;  %v1193_v27 = vpack.c.bf16 %v361_v39, %v359_v34  ;;  %v299_v14 = vld [vmem:[%s1764_s5 + $0x148] sm:$0xff]  ;;  %v2083_v13 = vmul.f32 %v361_v39, %v361_v39 }
  0xa8   : > { %2751 = vst [vmem:[#allocation37_spill] sm:$0xff] %v2037_v63  ;;  %2752 = vst [vmem:[#allocation38_spill] sm:$0xff] %v2042_v1  ;;  %v2067_v63 = vmul.f32 %v294_v16, %v294_v16 }
  0xa9   : > { %2753 = vst [vmem:[#allocation39_spill] sm:$0xff] %v2044_v31  ;;  %2754 = vst [vmem:[#allocation40_spill] sm:$0xff] %v2046_v8  ;;  %v301_v8 = vld [vmem:[%s1764_s5 + $0x158] sm:$0xff]  ;;  %v368_v31 = vld [vmem:[%s1764_s5 + $0x370] sm:$0xff] }
  0xaa   : > { %2758 = vst [vmem:[#allocation44_spill] sm:$0xff] %v2067_v63  ;;  %2763 = vst [vmem:[#allocation49_spill] sm:$0xff] %v2083_v13  ;;  %v1133_v39 = vpack.c.bf16 %v301_v8, %v299_v14 }
  0xac   : > { %1124 = vmatpush1.bf16.xpose.msra.mxu0 %v1123_v32  ;;  %v296_v32 = vld [vmem:[%s1764_s5 + $0x130] sm:$0xff] }
  0xad   : > { %1188 = vmatpush1.bf16.xpose.msra.mxu1 %v1187_v41  ;;  %1126 = vmatprep.subr.bf16.mxu0 %v1125_v62  ;;  %v2055_v41 = vmul.f32 %v354_v24, %v354_v24  ;;  %v2057_v62 = vmul.f32 %v356_v52, %v356_v52  ;;  %v2069_v21 = vmul.f32 %v296_v32, %v296_v32 }
  0xae   : > { %1190 = vmatprep.subr.bf16.mxu1 %v1189_v51  ;;  %v1127_v51 = vpack.c.bf16 %v292_v36, %v290_v53  ;;  %v358_v53 = vld [vmem:[%s1764_s5 + $0x320] sm:$0xff]  ;;  %v2074_v52 = vmul.f32 %v295_v61, %v295_v61  ;;  %v2076_v36 = vmul.f32 %v297_v56, %v297_v56  ;;  %v2078_v24 = vmul.f32 %v359_v34, %v359_v34  ;;  %v363_v61 = vld [vmem:[%s1764_s5 + $0x348] sm:$0xff]  ;;  %v365_v56 = vld [vmem:[%s1764_s5 + $0x358] sm:$0xff] }
  0xaf   : > { %2756 = vst [vmem:[#allocation42_spill] sm:$0xff] %v2055_v41  ;;  %2757 = vst [vmem:[#allocation43_spill] sm:$0xff] %v2057_v62  ;;  %v1195_v41 = vpack.c.bf16 %v360_v57, %v358_v53  ;;  %v298_v62 = vld [vmem:[%s1764_s5 + $0x140] sm:$0xff]  ;;  %v1197_v63 = vpack.c.bf16 %v365_v56, %v363_v61  ;;  %v303_v34 = vld [vmem:[%s1764_s5 + $0x168] sm:$0xff]  ;;  %v2115_v13 = vmul.f32 %v365_v56, %v365_v56 }
  0xb0   : > { %2759 = vst [vmem:[#allocation45_spill] sm:$0xff] %v2069_v21  ;;  %2760 = vst [vmem:[#allocation46_spill] sm:$0xff] %v2074_v52  ;;  %v2099_v21 = vmul.f32 %v298_v62, %v298_v62 }
  0xb1   : > { %2761 = vst [vmem:[#allocation47_spill] sm:$0xff] %v2076_v36  ;;  %2762 = vst [vmem:[#allocation48_spill] sm:$0xff] %v2078_v24  ;;  %v305_v24 = vld [vmem:[%s1764_s5 + $0x178] sm:$0xff]  ;;  %v372_v36 = vld [vmem:[%s1764_s5 + $0x390] sm:$0xff] }
  0xb2   : > { %2766 = vst [vmem:[#allocation52_spill] sm:$0xff] %v2099_v21  ;;  %2771 = vst [vmem:[#allocation57_spill] sm:$0xff] %v2115_v13  ;;  %v1137_v56 = vpack.c.bf16 %v305_v24, %v303_v34 }
  0xb4   : > { %1128 = vmatpush1.bf16.xpose.msra.mxu0 %v1127_v51  ;;  %v300_v51 = vld [vmem:[%s1764_s5 + $0x150] sm:$0xff] }
  0xb5   : > { %1192 = vmatpush1.bf16.xpose.msra.mxu1 %v1191_v60  ;;  %1130 = vmatprep.subr.bf16.mxu0 %v1129_v22  ;;  %v2087_v60 = vmul.f32 %v358_v53, %v358_v53  ;;  %v2089_v22 = vmul.f32 %v360_v57, %v360_v57  ;;  %v2101_v1 = vmul.f32 %v300_v51, %v300_v51  ;;  %v362_v57 = vld [vmem:[%s1764_s5 + $0x340] sm:$0xff] }
  0xb6   : > { %1194 = vmatprep.subr.bf16.mxu1 %v1193_v27  ;;  %v1131_v27 = vpack.c.bf16 %v296_v32, %v294_v16  ;;  %v2106_v16 = vmul.f32 %v299_v14, %v299_v14  ;;  %v2108_v32 = vmul.f32 %v301_v8, %v301_v8  ;;  %v2110_v53 = vmul.f32 %v363_v61, %v363_v61  ;;  %v367_v14 = vld [vmem:[%s1764_s5 + $0x368] sm:$0xff]  ;;  %v369_v8 = vld [vmem:[%s1764_s5 + $0x378] sm:$0xff] }
  0xb7   : > { %2764 = vst [vmem:[#allocation50_spill] sm:$0xff] %v2087_v60  ;;  %2765 = vst [vmem:[#allocation51_spill] sm:$0xff] %v2089_v22  ;;  %v1199_v60 = vpack.c.bf16 %v364_v30, %v362_v57  ;;  %v302_v22 = vld [vmem:[%s1764_s5 + $0x160] sm:$0xff]  ;;  %v1201_v21 = vpack.c.bf16 %v369_v8, %v367_v14  ;;  %v307_v61 = vld [vmem:[%s1764_s5 + $0x188] sm:$0xff]  ;;  %v2147_v13 = vmul.f32 %v369_v8, %v369_v8 }
  0xb8   : > { %2767 = vst [vmem:[#allocation53_spill] sm:$0xff] %v2101_v1  ;;  %2768 = vst [vmem:[#allocation54_spill] sm:$0xff] %v2106_v16  ;;  %v2131_v1 = vmul.f32 %v302_v22, %v302_v22 }
  0xb9   : > { %2769 = vst [vmem:[#allocation55_spill] sm:$0xff] %v2108_v32  ;;  %2770 = vst [vmem:[#allocation56_spill] sm:$0xff] %v2110_v53  ;;  %v309_v53 = vld [vmem:[%s1764_s5 + $0x198] sm:$0xff] }
  0xba   : > { %2774 = vst [vmem:[#allocation60_spill] sm:$0xff] %v2131_v1  ;;  %2777 = vst [vmem:[#allocation63_spill] sm:$0xff] %v2147_v13  ;;  %v1141_v8 = vpack.c.bf16 %v309_v53, %v307_v61 }
  0xbc   : > { %1132 = vmatpush1.bf16.xpose.msra.mxu0 %v1131_v27  ;;  %v304_v27 = vld [vmem:[%s1764_s5 + $0x170] sm:$0xff] }
  0xbd   : > { %1196 = vmatpush1.bf16.xpose.msra.mxu1 %v1195_v41  ;;  %1134 = vmatprep.subr.bf16.mxu0 %v1133_v39  ;;  %v2119_v41 = vmul.f32 %v362_v57, %v362_v57  ;;  %v2121_v39 = vmul.f32 %v364_v30, %v364_v30  ;;  %v2133_v52 = vmul.f32 %v304_v27, %v304_v27  ;;  %v366_v30 = vld [vmem:[%s1764_s5 + $0x360] sm:$0xff] }
  0xbe   : > { %1198 = vmatprep.subr.bf16.mxu1 %v1197_v63  ;;  %v1135_v63 = vpack.c.bf16 %v300_v51, %v298_v62  ;;  %v2138_v62 = vmul.f32 %v303_v34, %v303_v34  ;;  %v2140_v51 = vmul.f32 %v305_v24, %v305_v24  ;;  %v2142_v57 = vmul.f32 %v367_v14, %v367_v14  ;;  %v371_v34 = vld [vmem:[%s1764_s5 + $0x388] sm:$0xff]  ;;  %v373_v24 = vld [vmem:[%s1764_s5 + $0x398] sm:$0xff] }
  0xbf   : > { %2772 = vst [vmem:[#allocation58_spill] sm:$0xff] %v2119_v41  ;;  %2773 = vst [vmem:[#allocation59_spill] sm:$0xff] %v2121_v39  ;;  %v1203_v41 = vpack.c.bf16 %v368_v31, %v366_v30  ;;  %v306_v39 = vld [vmem:[%s1764_s5 + $0x180] sm:$0xff]  ;;  %v1205_v1 = vpack.c.bf16 %v373_v24, %v371_v34  ;;  %v2178_v14 = vld [vmem:[%s1764_s5 + $0x1a8] sm:$0xff]  ;;  %v2183_v32 = vmul.f32 %v373_v24, %v373_v24 }
  0xc0   : > { %2775 = vst [vmem:[#allocation61_spill] sm:$0xff] %v2133_v52  ;;  %2776 = vst [vmem:[#allocation62_spill] sm:$0xff] %v2142_v57  ;;  %v2163_v52 = vmul.f32 %v306_v39, %v306_v39  ;;  %v2181_v57 = vld [vmem:[%s1764_s5 + $0x1b8] sm:$0xff] }
  0xc1   : > { %2783 = vst [vmem:[#allocation69_spill] sm:$0xff] %v2183_v32  ;;  %v2219_v24 = vld [vmem:[%s1764_s5 + $0x1d8] sm:$0xff] }
  0xc2   : > { %2780 = vst [vmem:[#allocation66_spill] sm:$0xff] %v2163_v52  ;;  %v1145_v52 = vpack.c.bf16 %v2181_v57, %v2178_v14  ;;  %2791 = vst [vmem:[#allocation77_spill] sm:$0xff] %v2219_v24 }
  0xc4   : > { %1136 = vmatpush1.bf16.xpose.msra.mxu0 %v1135_v63  ;;  %v308_v63 = vld [vmem:[%s1764_s5 + $0x190] sm:$0xff] }
  0xc5   : > { %1200 = vmatpush1.bf16.xpose.msra.mxu1 %v1199_v60  ;;  %1138 = vmatprep.subr.bf16.mxu0 %v1137_v56  ;;  %v2151_v60 = vmul.f32 %v366_v30, %v366_v30  ;;  %v2153_v56 = vmul.f32 %v368_v31, %v368_v31  ;;  %v2165_v16 = vmul.f32 %v308_v63, %v308_v63  ;;  %v370_v31 = vld [vmem:[%s1764_s5 + $0x380] sm:$0xff] }
  0xc6   : > { %1202 = vmatprep.subr.bf16.mxu1 %v1201_v21  ;;  %v1139_v21 = vpack.c.bf16 %v304_v27, %v302_v22  ;;  %v2170_v22 = vmul.f32 %v307_v61, %v307_v61  ;;  %v2172_v27 = vmul.f32 %v309_v53, %v309_v53  ;;  %v2174_v30 = vmul.f32 %v371_v34, %v371_v34  ;;  %v2192_v53 = vld [vmem:[%s1764_s5 + $0x3a8] sm:$0xff]  ;;  %v2195_v34 = vld [vmem:[%s1764_s5 + $0x3b8] sm:$0xff] }
  0xc7   : > { %2778 = vst [vmem:[#allocation64_spill] sm:$0xff] %v2151_v60  ;;  %2779 = vst [vmem:[#allocation65_spill] sm:$0xff] %v2153_v56  ;;  %v2189_v61 = vmul.f32 %v372_v36, %v372_v36  ;;  %v312_v60 = vld [vmem:[%s1764_s5 + $0x1b0] sm:$0xff]  ;;  %v1209_v56 = vpack.c.bf16 %v2195_v34, %v2192_v53 }
  0xc8   : > { %2781 = vst [vmem:[#allocation67_spill] sm:$0xff] %v2165_v16  ;;  %2782 = vst [vmem:[#allocation68_spill] sm:$0xff] %v2174_v30  ;;  %v310_v16 = vld [vmem:[%s1764_s5 + $0x1a0] sm:$0xff] }
  0xc9   : > { %2785 = vst [vmem:[#allocation71_spill] sm:$0xff] %v2189_v61  ;;  %2786 = vst [vmem:[#allocation72_spill] sm:$0xff] %v2192_v53  ;;  %v2207_v13 = vmul.f32 %v310_v16, %v310_v16  ;;  %v316_v61 = vld [vmem:[%s1764_s5 + $0x1d0] sm:$0xff] }
  0xca   : > { %2787 = vst [vmem:[#allocation73_spill] sm:$0xff] %v2195_v34 }
  0xcb   : > { %2788 = vst [vmem:[#allocation74_spill] sm:$0xff] %v2207_v13 }
  0xcc   : > { %1140 = vmatpush1.bf16.xpose.msra.mxu0 %v1139_v21  ;;  %v2187_v21 = vmul.f32 %v370_v31, %v370_v31 }
  0xcd   : > { %1204 = vmatpush1.bf16.xpose.msra.mxu1 %v1203_v41  ;;  %1142 = vmatprep.subr.bf16.mxu0 %v1141_v8  ;;  %v1143_v8 = vpack.c.bf16 %v308_v63, %v306_v39  ;;  %v1207_v41 = vpack.c.bf16 %v372_v36, %v370_v31  ;;  %v374_v36 = vld [vmem:[%s1764_s5 + $0x3a0] sm:$0xff]  ;;  %v376_v63 = vld [vmem:[%s1764_s5 + $0x3b0] sm:$0xff]  ;;  %v2216_v31 = vld [vmem:[%s1764_s5 + $0x1c8] sm:$0xff] }
  0xce   : > { %1206 = vmatprep.subr.bf16.mxu1 %v1205_v1  ;;  %2784 = vst [vmem:[#allocation70_spill] sm:$0xff] %v2187_v21  ;;  %v2209_v1 = vmul.f32 %v312_v60, %v312_v60  ;;  %2790 = vst [vmem:[#allocation76_spill] sm:$0xff] %v2216_v31  ;;  %v2223_v53 = vmul.f32 %v374_v36, %v374_v36  ;;  %v2225_v30 = vmul.f32 %v376_v63, %v376_v63  ;;  %v314_v21 = vld [vmem:[%s1764_s5 + $0x1c0] sm:$0xff] }
  0xcf   : > { %v1149_v39 = vpack.c.bf16 %v2219_v24, %v2216_v31  ;;  %v2239_v13 = vmul.f32 %v314_v21, %v314_v21 }
  0xd0   : > { %2789 = vst [vmem:[#allocation75_spill] sm:$0xff] %v2209_v1  ;;  %2792 = vst [vmem:[#allocation78_spill] sm:$0xff] %v2223_v53  ;;  %v2241_v1 = vmul.f32 %v316_v61, %v316_v61  ;;  %v318_v53 = vld [vmem:[%s1764_s5 + $0x1e0] sm:$0xff] }
  0xd1   : > { %2793 = vst [vmem:[#allocation79_spill] sm:$0xff] %v2225_v30  ;;  %2796 = vst [vmem:[#allocation82_spill] sm:$0xff] %v2239_v13  ;;  %v320_v30 = vld [vmem:[%s1764_s5 + $0x1f0] sm:$0xff]  ;;  %v2271_v13 = vmul.f32 %v318_v53, %v318_v53 }
  0xd2   : > { %2797 = vst [vmem:[#allocation83_spill] sm:$0xff] %v2241_v1  ;;  %v2273_v1 = vmul.f32 %v320_v30, %v320_v30 }
  0xd4   : > { %1144 = vmatpush1.bf16.xpose.msra.mxu0 %v1143_v8  ;;  %v2228_v8 = vld [vmem:[%s1764_s5 + $0x3c8] sm:$0xff] }
  0xd5   : > { %1208 = vmatpush1.bf16.xpose.msra.mxu1 %v1207_v41  ;;  %1146 = vmatprep.subr.bf16.mxu0 %v1145_v52  ;;  %2794 = vst [vmem:[#allocation80_spill] sm:$0xff] %v2228_v8  ;;  %v2231_v41 = vld [vmem:[%s1764_s5 + $0x3d8] sm:$0xff]  ;;  %v1147_v52 = vpack.c.bf16 %v312_v60, %v310_v16  ;;  %v378_v16 = vld [vmem:[%s1764_s5 + $0x3c0] sm:$0xff]  ;;  %v380_v60 = vld [vmem:[%s1764_s5 + $0x3d0] sm:$0xff] }
  0xd6   : > { %1210 = vmatprep.subr.bf16.mxu1 %v1209_v56  ;;  %2795 = vst [vmem:[#allocation81_spill] sm:$0xff] %v2231_v41  ;;  %v1211_v56 = vpack.c.bf16 %v376_v63, %v374_v36  ;;  %v1213_v34 = vpack.c.bf16 %v2231_v41, %v2228_v8  ;;  %v2248_v36 = vld [vmem:[%s1764_s5 + $0x1e8] sm:$0xff]  ;;  %v2251_v63 = vld [vmem:[%s1764_s5 + $0x1f8] sm:$0xff]  ;;  %v2255_v8 = vmul.f32 %v378_v16, %v378_v16 }
  0xd7   : > { %2798 = vst [vmem:[#allocation84_spill] sm:$0xff] %v2248_v36  ;;  %2799 = vst [vmem:[#allocation85_spill] sm:$0xff] %v2251_v63  ;;  %v2257_v24 = vmul.f32 %v380_v60, %v380_v60  ;;  %v1153_v32 = vpack.c.bf16 %v2251_v63, %v2248_v36 }
  0xd9   : > { %v1343_v31 = vpack.c.bf16 %v2257_v24, %v2255_v8 }
  0xdc   : > { %1148 = vmatpush1.bf16.xpose.msra.mxu0 %v1147_v52  ;;  %v2260_v52 = vld [vmem:[%s1764_s5 + $0x3e8] sm:$0xff] }
  0xdd   : > { %1212 = vmatpush1.bf16.xpose.msra.mxu1 %v1211_v56  ;;  %1150 = vmatprep.subr.bf16.mxu0 %v1149_v39  ;;  %2800 = vst [vmem:[#allocation86_spill] sm:$0xff] %v2260_v52  ;;  %v2263_v56 = vld [vmem:[%s1764_s5 + $0x3f8] sm:$0xff]  ;;  %v1151_v39 = vpack.c.bf16 %v316_v61, %v314_v21  ;;  %v382_v21 = vld [vmem:[%s1764_s5 + $0x3e0] sm:$0xff]  ;;  %v384_v61 = vld [vmem:[%s1764_s5 + $0x3f0] sm:$0xff] }
  0xde   : > { %1214 = vmatprep.subr.bf16.mxu1 %v1213_v34  ;;  %2801 = vst [vmem:[#allocation87_spill] sm:$0xff] %v2263_v56  ;;  %v1215_v34 = vpack.c.bf16 %v380_v60, %v378_v16  ;;  %v1217_v41 = vpack.c.bf16 %v2263_v56, %v2260_v52  ;;  %v1283_v16 = vpack.c.bf16 %v2273_v1, %v2271_v13 }
  0xdf   : > { %v2281_v60 = vmul.f32 %v382_v21, %v382_v21  ;;  %v2283_v63 = vmul.f32 %v384_v61, %v384_v61  ;;  %v1155_v56 = vpack.c.bf16 %v320_v30, %v318_v53  ;;  %v1219_v52 = vpack.c.bf16 %v384_v61, %v382_v21  ;;  %v2842_v21 = vld [vmem:[#allocation21_spill] sm:$0xff]  ;;  %v2845_v61 = vld [vmem:[#allocation23_spill] sm:$0xff] }
  0xe0   : > { %v2804_v30 = vpack.c.bf16 %v1785_v15, %v1780_v11  ;;  %v2805_v53 = vpack.c.bf16 %v1789_v18, %v1787_v17  ;;  %v2808_v11 = vpack.c.bf16 %v1824_v47, %v1818_v44  ;;  %v2809_v15 = vpack.c.bf16 %v1828_v49, %v1826_v48  ;;  %v2820_v48 = vld [vmem:[#allocation15_spill] sm:$0xff]  ;;  %v2821_v49 = vld [vmem:[#allocation14_spill] sm:$0xff] }
  0xe1   : > { %v1347_v36 = vpack.c.bf16 %v2283_v63, %v2281_v60  ;;  %v2810_v17 = vpack.c.bf16 %v1848_v3, %v1846_v2  ;;  %v2811_v18 = vpack.c.bf16 %v1872_v29, %v1857_v12  ;;  %v2822_v2 = vpack.c.bf16 %v2820_v48, %v2821_v49  ;;  %v2823_v3 = vld [vmem:[#allocation18_spill] sm:$0xff]  ;;  %v2868_v48 = vld [vmem:[#allocation43_spill] sm:$0xff] }
  0xe2   : > { %v2826_v12 = vpack.c.bf16 %v1945_v40, %v1937_v58  ;;  %v2832_v40 = vpack.c.bf16 %v1935_v54, %v1933_v50  ;;  %v2833_v58 = vld [vmem:[#allocation20_spill] sm:$0xff]  ;;  %v2847_v54 = vld [vmem:[#allocation31_spill] sm:$0xff]  ;;  %v2869_v49 = vld [vmem:[#allocation42_spill] sm:$0xff] }
  0xe4   : > { %1152 = vmatpush1.bf16.xpose.msra.mxu0 %v1151_v39  ;;  %v256_v39 = vld [vmem:[#allocation2] sm:$0xff] }
  0xe5   : > { %1216 = vmatpush1.bf16.xpose.msra.mxu1 %v1215_v34  ;;  %1154 = vmatprep.subr.bf16.mxu0 %v1153_v32  ;;  %v2802_v32 = vpack.c.bf16 %v1775_v5, %v1773_v4  ;;  %v2807_v4 = vpack.c.bf16 %v1822_v46, %v1820_v45  ;;  %v1585_v5 = vmov 1.0   ;;  %v2817_v45 = vld [vmem:[#allocation12_spill] sm:$0xff]  ;;  %v2818_v46 = vld [vmem:[#allocation11_spill] sm:$0xff]  ;;  %v2839_v34 = vld [vmem:[#allocation26_spill] sm:$0xff] }
  0xe6   : > { %1218 = vmatprep.subr.bf16.mxu1 %v1217_v41  ;;  %v2803_v41 = vpack.c.bf16 %v1798_v26, %v1796_v25  ;;  %v2812_v25 = vpack.c.bf16 %v1852_v7, %v1850_v6  ;;  %v2813_v26 = vpack.c.bf16 %v1864_v20, %v1862_v19  ;;  %v2819_v47 = vpack.c.bf16 %v2817_v45, %v2818_v46  ;;  %v2824_v6 = vld [vmem:[#allocation16_spill] sm:$0xff]  ;;  %v2828_v20 = vld [vmem:[#allocation17_spill] sm:$0xff] }
  0xe7   : > { %v2825_v7 = vpack.c.bf16 %v2823_v3, %v2824_v6  ;;  %v2827_v19 = vpack.c.bf16 %v1923_v0, %v1918_v23  ;;  %v2829_v29 = vpack.c.bf16 %v1927_v10, %v2828_v20  ;;  %v2836_v23 = vld [vmem:[#allocation25_spill] sm:$0xff]  ;;  %v2866_v46 = vld [vmem:[#allocation36_spill] sm:$0xff]  ;;  %v2871_v3 = vld [vmem:[#allocation47_spill] sm:$0xff] }
  0xe8   : > { %v2837_v10 = vpack.c.bf16 %v1983_v28, %v2836_v23  ;;  %v2865_v45 = vld [vmem:[#allocation37_spill] sm:$0xff]  ;;  %v2872_v6 = vld [vmem:[#allocation46_spill] sm:$0xff] }
  0xe9   : > { %v2884_v23 = vld [vmem:[#allocation54_spill] sm:$0xff] }
  0xec   : > { %1156 = vmatpush1.bf16.xpose.msra.mxu0 %v1155_v56  ;;  %v2838_v56 = vld [vmem:[#allocation27_spill] sm:$0xff] }
  0xed   : > { %1220 = vmatpush1.bf16.xpose.msra.mxu1 %v1219_v52  ;;  %1222 = vmatprep.subr.bf16.mxu0 %v2802_v32  ;;  %v2806_v52 = vpack.c.bf16 %v1816_v43, %v1814_v42  ;;  %v2814_v42 = vpack.c.bf16 %v1883_v38, %v1881_v37  ;;  %v2815_v43 = vld [vmem:[#allocation13_spill] sm:$0xff]  ;;  %v2830_v37 = vpack.c.bf16 %v1969_v59, %v1967_v33  ;;  %v2841_v33 = vld [vmem:[#allocation22_spill] sm:$0xff] }
  0xee   : > { %1286 = vmatprep.subr.bf16.mxu1 %v2803_v41  ;;  %v2816_v44 = vpack.c.bf16 %v1905_v35, %v2815_v43  ;;  %v2831_v38 = vpack.c.bf16 %v1973_v9, %v1971_v55  ;;  %v2834_v35 = vld [vmem:[#allocation19_spill] sm:$0xff]  ;;  %v2840_v59 = vpack.c.bf16 %v2838_v56, %v2839_v34  ;;  %v2843_v55 = vpack.c.bf16 %v2841_v33, %v2842_v21  ;;  %v2844_v9 = vld [vmem:[#allocation24_spill] sm:$0xff]  ;;  %v2848_v32 = vld [vmem:[#allocation30_spill] sm:$0xff] }
  0xef   : > { %v2835_v0 = vpack.c.bf16 %v2833_v58, %v2834_v35  ;;  %v2846_v50 = vpack.c.bf16 %v2844_v9, %v2845_v61  ;;  %v2849_v41 = vpack.c.bf16 %v2847_v54, %v2848_v32  ;;  %v2863_v43 = vld [vmem:[#allocation40_spill] sm:$0xff]  ;;  %v2881_v58 = vld [vmem:[#allocation50_spill] sm:$0xff]  ;;  %v2886_v56 = vld [vmem:[#allocation57_spill] sm:$0xff]  ;;  %v2895_v54 = vpack.c.bf16 %v2140_v51, %v2138_v62 }
  0xf0   : > { %v2887_v34 = vld [vmem:[#allocation56_spill] sm:$0xff]  ;;  %v2889_v33 = vld [vmem:[#allocation53_spill] sm:$0xff]  ;;  %v2892_v9 = vld [vmem:[#allocation59_spill] sm:$0xff]  ;;  %v2905_v62 = vpack.c.bf16 %v2172_v27, %v2170_v22  ;;  %v582_v51 = vmul.f32 %v2178_v14, %v2178_v14 }
  0xf1   : > { %v2890_v21 = vld [vmem:[#allocation52_spill] sm:$0xff]  ;;  %v2893_v61 = vld [vmem:[#allocation58_spill] sm:$0xff]  ;;  %v2896_v32 = vld [vmem:[#allocation63_spill] sm:$0xff] }
  0xf2   : > { %v2911_v22 = vld [vmem:[#allocation67_spill] sm:$0xff]  ;;  %v2912_v27 = vld [vmem:[#allocation66_spill] sm:$0xff] }
  0xf3   : > { %452 = vmatmul.mubr.f32.vlgmr.msra.gmra.mrb[0].mxu0 %v256_v39  ;;  %v2914_v14 = vld [vmem:[#allocation71_spill] sm:$0xff] }
  0xf4   : > { %523 = vmatmul.mubr.f32.vlgmr.msra.gmra.mrb[0].mxu1 %v256_v39  ;;  %1224 = vmatpush1.bf16.xpose.msra.mxu0 %v2804_v30  ;;  %v2850_v39 = vld [vmem:[#allocation33_spill] sm:$0xff]  ;;  %v2851_v30 = vld [vmem:[#allocation32_spill] sm:$0xff] }
  0xf5   : > { %1288 = vmatpush1.bf16.xpose.msra.mxu1 %v2805_v53  ;;  %1226 = vmatprep.subr.bf16.mxu0 %v2806_v52  ;;  %v2852_v28 = vpack.c.bf16 %v2850_v39, %v2851_v30  ;;  %v2853_v53 = vld [vmem:[#allocation29_spill] sm:$0xff]  ;;  %v2854_v52 = vld [vmem:[#allocation28_spill] sm:$0xff] }
  0xf6   : > { %1290 = vmatprep.subr.bf16.mxu1 %v2807_v4  ;;  %721 = vmatprep.mubr.f32.mxu0 %v1585_v5  ;;  %v2855_v4 = vpack.c.bf16 %v2853_v53, %v2854_v52  ;;  %v386_v30 = vld [vmem:[%s2630_s2] sm:$0xff]  ;;  %v2900_v52 = vld [vmem:[#allocation60_spill] sm:$0xff] }
  0xf7   : > { %792 = vmatprep.mubr.f32.mxu1 %v1585_v5  ;;  %v2899_v53 = vld [vmem:[#allocation61_spill] sm:$0xff] }
  0xfc   : > { %1228 = vmatpush1.bf16.xpose.msra.mxu0 %v2808_v11  ;;  %v2856_v11 = vld [vmem:[#allocation35_spill] sm:$0xff] }
  0xfd   : > { %1292 = vmatpush1.bf16.xpose.msra.mxu1 %v2809_v15  ;;  %1230 = vmatprep.subr.bf16.mxu0 %v2810_v17  ;;  %v2857_v15 = vld [vmem:[#allocation34_spill] sm:$0xff] }
  0xfe   : > { %1294 = vmatprep.subr.bf16.mxu1 %v2811_v18  ;;  %v2858_v17 = vpack.c.bf16 %v2856_v11, %v2857_v15  ;;  %v2859_v18 = vld [vmem:[#allocation39_spill] sm:$0xff]  ;;  %v2902_v11 = vld [vmem:[#allocation65_spill] sm:$0xff]  ;;  %v2903_v15 = vld [vmem:[#allocation64_spill] sm:$0xff] }
 0x104   : > { %1232 = vmatpush1.bf16.xpose.msra.mxu0 %v2812_v25  ;;  %v2860_v25 = vld [vmem:[#allocation38_spill] sm:$0xff] }
 0x105   : > { %1296 = vmatpush1.bf16.xpose.msra.mxu1 %v2813_v26  ;;  %1234 = vmatprep.subr.bf16.mxu0 %v2814_v42  ;;  %v2861_v26 = vpack.c.bf16 %v2859_v18, %v2860_v25  ;;  %v2862_v42 = vld [vmem:[#allocation41_spill] sm:$0xff]  ;;  %v584_v18 = vmul.f32 %v2181_v57, %v2181_v57  ;;  %v2917_v57 = vld [vmem:[#allocation76_spill] sm:$0xff] }
 0x106   : > { %1298 = vmatprep.subr.bf16.mxu1 %v2816_v44  ;;  %v2864_v44 = vpack.c.bf16 %v2862_v42, %v2863_v43  ;;  %v2906_v25 = vld [vmem:[#allocation69_spill] sm:$0xff]  ;;  %v2909_v43 = vld [vmem:[#allocation72_spill] sm:$0xff] }
 0x10c   : > { %1236 = vmatpush1.bf16.xpose.msra.mxu0 %v2819_v47  ;;  %v2867_v47 = vpack.c.bf16 %v2865_v45, %v2866_v46  ;;  %v2910_v45 = vld [vmem:[#allocation73_spill] sm:$0xff] }
 0x10d   : > { %1300 = vmatpush1.bf16.xpose.msra.mxu1 %v2822_v2  ;;  %1238 = vmatprep.subr.bf16.mxu0 %v2825_v7  ;;  %v2870_v2 = vpack.c.bf16 %v2868_v48, %v2869_v49  ;;  %v2873_v7 = vpack.c.bf16 %v2871_v3, %v2872_v6  ;;  %v648_v46 = vmul.f32 %v2910_v45, %v2910_v45 }
 0x10e   : > { %1302 = vmatprep.subr.bf16.mxu1 %v2826_v12  ;;  %v2874_v12 = vld [vmem:[#allocation49_spill] sm:$0xff]  ;;  %v2913_v49 = vpack.c.bf16 %v2911_v22, %v2912_v27  ;;  %v586_v6 = vmul.f32 %v2917_v57, %v2917_v57 }
 0x114   : > { %1240 = vmatpush1.bf16.xpose.msra.mxu0 %v2827_v19  ;;  %v2875_v19 = vld [vmem:[#allocation48_spill] sm:$0xff] }
 0x115   : > { %1304 = vmatpush1.bf16.xpose.msra.mxu1 %v2829_v29  ;;  %1242 = vmatprep.subr.bf16.mxu0 %v2830_v37  ;;  %v2876_v20 = vpack.c.bf16 %v2874_v12, %v2875_v19  ;;  %v2877_v29 = vld [vmem:[#allocation45_spill] sm:$0xff]  ;;  %v2878_v37 = vld [vmem:[#allocation44_spill] sm:$0xff] }
 0x116   : > { %1306 = vmatprep.subr.bf16.mxu1 %v2831_v38  ;;  %v2879_v38 = vpack.c.bf16 %v2877_v29, %v2878_v37  ;;  %v2919_v19 = vld [vmem:[#allocation80_spill] sm:$0xff]  ;;  %v2920_v29 = vld [vmem:[#allocation81_spill] sm:$0xff] }
 0x117   : > { %v652_v37 = vmul.f32 %v2920_v29, %v2920_v29 }
 0x11c   : > { %1244 = vmatpush1.bf16.xpose.msra.mxu0 %v2832_v40  ;;  %v2880_v40 = vld [vmem:[#allocation51_spill] sm:$0xff] }
 0x11d   : > { %1308 = vmatpush1.bf16.xpose.msra.mxu1 %v2835_v0  ;;  %1246 = vmatprep.subr.bf16.mxu0 %v2837_v10  ;;  %v2882_v35 = vpack.c.bf16 %v2880_v40, %v2881_v58  ;;  %v2883_v0 = vld [vmem:[#allocation55_spill] sm:$0xff] }
 0x11e   : > { %1310 = vmatprep.subr.bf16.mxu1 %v2840_v59  ;;  %v2885_v10 = vpack.c.bf16 %v2883_v0, %v2884_v23  ;;  %v2888_v59 = vpack.c.bf16 %v2886_v56, %v2887_v34  ;;  %v2921_v58 = vld [vmem:[#allocation75_spill] sm:$0xff]  ;;  %v2927_v34 = vld [vmem:[#allocation84_spill] sm:$0xff] }
 0x11f   : > { %v2924_v23 = vld [vmem:[#allocation79_spill] sm:$0xff] }
 0x124   : > { %1248 = vmatpush1.bf16.xpose.msra.mxu0 %v2843_v55  ;;  %v2891_v55 = vpack.c.bf16 %v2889_v33, %v2890_v21  ;;  %v2928_v33 = vld [vmem:[#allocation85_spill] sm:$0xff] }
 0x125   : > { %1312 = vmatpush1.bf16.xpose.msra.mxu1 %v2846_v50  ;;  %1250 = vmatprep.subr.bf16.mxu0 %v2849_v41  ;;  %v2894_v50 = vpack.c.bf16 %v2892_v9, %v2893_v61  ;;  %v2897_v41 = vld [vmem:[#allocation62_spill] sm:$0xff]  ;;  %v592_v21 = vmul.f32 %v2928_v33, %v2928_v33  ;;  %v2930_v61 = vld [vmem:[#allocation87_spill] sm:$0xff] }
 0x126   : > { %1314 = vmatprep.subr.bf16.mxu1 %v2852_v28  ;;  %v2898_v39 = vpack.c.bf16 %v2896_v32, %v2897_v41  ;;  %v1586_v28 = vmov 0   ;;  %v2931_v41 = vld [vmem:[#allocation83_spill] sm:$0xff] }
 0x127   : > { %1420 = vset.pattern.permute.xlu0 %v1586_v28 }
 0x128   : > { %907 = vperm.xlu0 %1420, %v386_v30  }
 0x12c   : > { %1252 = vmatpush1.bf16.xpose.msra.mxu0 %v2855_v4  ;;  %v2901_v4 = vpack.c.bf16 %v2899_v53, %v2900_v52 }
 0x12d   : > { %1316 = vmatpush1.bf16.xpose.msra.mxu1 %v2858_v17  ;;  %1254 = vmatprep.subr.bf16.mxu0 %v2861_v26  ;;  %v2904_v17 = vpack.c.bf16 %v2902_v11, %v2903_v15  ;;  %v2907_v26 = vld [vmem:[#allocation68_spill] sm:$0xff]  ;;  %v807_v15 = vlaneseq }
 0x12e   : > { %1318 = vmatprep.subr.bf16.mxu1 %v2864_v44  ;;  %v2908_v42 = vpack.c.bf16 %v2906_v25, %v2907_v26  ;;  %v646_v44 = vmul.f32 %v2909_v43, %v2909_v43 }
 0x130   : > { %v1337_v48 = vpack.c.bf16 %v648_v46, %v646_v44 }
 0x134   : > { %1256 = vmatpush1.bf16.xpose.msra.mxu0 %v2867_v47  ;;  %v1273_v47 = vpack.c.bf16 %v584_v18, %v582_v51 }
 0x135   : > { %1320 = vmatpush1.bf16.xpose.msra.mxu1 %v2870_v2  ;;  %1258 = vmatprep.subr.bf16.mxu0 %v2873_v7  ;;  %v2915_v2 = vld [vmem:[#allocation70_spill] sm:$0xff]  ;;  %v2918_v7 = vld [vmem:[#allocation77_spill] sm:$0xff] }
 0x136   : > { %1322 = vmatprep.subr.bf16.mxu1 %v2876_v20  ;;  %v2916_v3 = vpack.c.bf16 %v2914_v14, %v2915_v2  ;;  %v588_v12 = vmul.f32 %v2918_v7, %v2918_v7  ;;  %v650_v20 = vmul.f32 %v2919_v19, %v2919_v19  ;;  %v897_v19 = vand.u32 127, %v807_v15 }
 0x138   : > { %v1341_v40 = vpack.c.bf16 %v652_v37, %v650_v20 }
 0x13c   : > { %1260 = vmatpush1.bf16.xpose.msra.mxu0 %v2879_v38  ;;  %v1277_v38 = vpack.c.bf16 %v588_v12, %v586_v6 }
 0x13d   : > { %1324 = vmatpush1.bf16.xpose.msra.mxu1 %v2882_v35  ;;  %1262 = vmatprep.subr.bf16.mxu0 %v2885_v10  ;;  %v2922_v35 = vld [vmem:[#allocation74_spill] sm:$0xff] }
 0x13e   : > { %1326 = vmatprep.subr.bf16.mxu1 %v2888_v59  ;;  %v2923_v0 = vpack.c.bf16 %v2921_v58, %v2922_v35  ;;  %v2925_v10 = vld [vmem:[#allocation78_spill] sm:$0xff]  ;;  %v590_v59 = vmul.f32 %v2927_v34, %v2927_v34  ;;  %v901_v58 = vstv %s1083_s29  ;;  %v898_v35 = vadd.s32 128, %v897_v19 }
 0x13f   : > { %v2926_v56 = vpack.c.bf16 %v2924_v23, %v2925_v10  ;;  %v2511_v23 = vadd.s32 %v901_v58, %v897_v19 }
 0x140   : > { %v2517_v34 = vadd.s32 %v901_v58, %v898_v35 }
 0x141   : > { %vm921_vm8 = vcmp.lt.s32.totalorder %v2511_v23, 1000 }
 0x144   : > { %1264 = vmatpush1.bf16.xpose.msra.mxu0 %v2891_v55  ;;  %v2929_v55 = vld [vmem:[#allocation86_spill] sm:$0xff] }
 0x145   : > { %1328 = vmatpush1.bf16.xpose.msra.mxu1 %v2894_v50  ;;  %1266 = vmatprep.subr.bf16.mxu0 %v2895_v54  ;;  %v654_v9 = vmul.f32 %v2929_v55, %v2929_v55  ;;  %v656_v50 = vmul.f32 %v2930_v61, %v2930_v61  ;;  %v1281_v54 = vpack.c.bf16 %v592_v21, %v590_v59 }
 0x146   : > { %1330 = vmatprep.subr.bf16.mxu1 %v2898_v39  ;;  %v2932_v39 = vld [vmem:[#allocation82_spill] sm:$0xff] }
 0x147   : > { %v1345_v32 = vpack.c.bf16 %v656_v50, %v654_v9  ;;  %v2933_v30 = vpack.c.bf16 %v2931_v41, %v2932_v39 }
 0x14c   : > { %1268 = vmatpush1.bf16.xpose.msra.mxu0 %v2901_v4 }
 0x14d   : > { %1332 = vmatpush1.bf16.xpose.msra.mxu1 %v2904_v17  ;;  %1270 = vmatprep.subr.bf16.mxu0 %v2905_v62 }
 0x14e   : > { %1334 = vmatprep.subr.bf16.mxu1 %v2908_v42 }
 0x154   : > { %1272 = vmatpush1.bf16.xpose.msra.mxu0 %v2913_v49 }
 0x155   : > { %1336 = vmatpush1.bf16.xpose.msra.mxu1 %v2916_v3  ;;  %1274 = vmatprep.subr.bf16.mxu0 %v1273_v47 }
 0x156   : > { %1338 = vmatprep.subr.bf16.mxu1 %v1337_v48 }
 0x15c   : > { %1276 = vmatpush1.bf16.xpose.msra.mxu0 %v2923_v0  ;;  %v900_v0 = vadd.s32 384, %v897_v19 }
 0x15d   : > { %1340 = vmatpush1.bf16.xpose.msra.mxu1 %v2926_v56  ;;  %1278 = vmatprep.subr.bf16.mxu0 %v1277_v38 }
 0x15e   : > { %1342 = vmatprep.subr.bf16.mxu1 %v1341_v40  ;;  %v899_v40 = vadd.s32 256, %v897_v19  ;;  %v2519_v59 = vadd.s32 %v901_v58, %v900_v0 }
 0x160   : > { %v2513_v10 = vadd.s32 %v901_v58, %v899_v40 }
 0x162   : > { %vm923_vm12 = vcmp.lt.s32.totalorder %v2513_v10, 1000 }
 0x164   : > { %1280 = vmatpush1.bf16.xpose.msra.mxu0 %v2933_v30 }
 0x165   : > { %1344 = vmatpush1.bf16.xpose.msra.mxu1 %v1343_v31  ;;  %1282 = vmatprep.subr.bf16.mxu0 %v1281_v54 }
 0x166   : > { %1346 = vmatprep.subr.bf16.mxu1 %v1345_v32 }
 0x16c   : > { %1284 = vmatpush1.bf16.xpose.msra.mxu0 %v1283_v16 }
 0x16d   : > { %1348 = vmatpush1.bf16.xpose.msra.mxu1 %v1347_v36  ;;  %v808_v36 = vshrl.u32 %v807_v15, 7 }
 0x16f   : > { %v809_v63 = vsub.s32 0, %v808_v36 }
 0x173   : > { %722 = vmatmul.mubr.f32.vlgmr.msra.gmra.mrb[2].mxu0 %v1585_v5 }
 0x174   : > { %793 = vmatmul.mubr.f32.vlgmr.msra.gmra.mrb[2].mxu1 %v1585_v5 }
 0x1a7   : > { %v2515_v56 = vpop.permute.xlu0 %907 }
 0x1a8   : > { %vm909_vm0 = vcmp.eq.s32.totalorder %v2511_v23, %v2515_v56  ;;  %vm911_vm3 = vcmp.eq.s32.totalorder %v2513_v10, %v2515_v56  ;;  %vm910_vm7 = vcmp.eq.s32.totalorder %v2517_v34, %v2515_v56  ;;  %vm912_vm11 = vcmp.eq.s32.totalorder %v2519_v59, %v2515_v56 }
 0x1c6   : > { %v453_v28 = vpop.f32.mrb[0].mxu0 }
 0x1c7   : > { %v524_v53 = vpop.f32.mrb[0].mxu1  ;;  %v455_v52 = vpop.f32.mrb[1].mxu0 }
 0x1c8   : > { %v526_v4 = vpop.f32.mrb[1].mxu1 }
 0x246   : > { %v723_v24 = vpop.f32.mrb[2].mxu0 }
 0x247   : > { %v799_v31 = vmax.f32 %v723_v24, 1e-24  ;;  %v794_v8 = vpop.f32.mrb[2].mxu1  ;;  %v725_v11 = vpop.f32.mrb[3].mxu0 }
 0x248   : > { %v801_v17 = vmax.f32 %v794_v8, 1e-24  ;;  %v800_v13 = vmax.f32 %v725_v11, 1e-24  ;;  %v796_v1 = vpop.f32.mrb[3].mxu1 }
 0x249   : > { %1421 = vrsqrt.f32 %v799_v31  ;;  %v802_v16 = vmax.f32 %v796_v1, 1e-24 }
 0x24a   : > { %1423 = vrsqrt.f32 %v801_v17 }
 0x24b   : > { %1425 = vrsqrt.f32 %v800_v13 }
 0x24c   : > { %1427 = vrsqrt.f32 %v802_v16 }
 0x253   : > { %v1422_v60 = vpop.eup %1421 }
 0x254   : > { %v1424_v5 = vpop.eup %1423  ;;  %v810_v62 = vrot.slane %v1422_v60, %v809_v63 }
 0x255   : > { %v1426_v51 = vpop.eup %1425  ;;  %v818_v18 = vrot.slane %v1424_v5, %v809_v63 }
 0x256   : > { %v1428_v25 = vpop.eup %1427  ;;  %v2492_v26 = vmul.f32 %v810_v62, %v453_v28  ;;  %v814_v42 = vrot.slane %v1426_v51, %v809_v63 }
 0x257   : > { %v2494_v43 = vmul.f32 %v818_v18, %v524_v53  ;;  %v822_v44 = vrot.slane %v1428_v25, %v809_v63 }
 0x258   : > { %v827_v45 = vmul.f32 %v2492_v26, %v2492_v26  ;;  %v2498_v46 = vmul.f32 %v814_v42, %v455_v52  ;;  %v871_v33 = vmul.f32 0.87758255, %v2492_v26  ;;  %vm883_vm2 = vcmp.gt.f32.partialorder %v2492_v26, -0.87758255 }
 0x259   : > { %v829_v47 = vmul.f32 %v2494_v43, %v2494_v43  ;;  %v2502_v48 = vmul.f32 %v822_v44, %v526_v4  ;;  %v873_v9 = vmul.f32 0.87758255, %v2494_v43  ;;  %vm885_vm6 = vcmp.gt.f32.partialorder %v2494_v43, -0.87758255 }
 0x25a   : > { %v831_v22 = vsub.f32 1.0, %v827_v45  ;;  %v828_v27 = vmul.f32 %v2498_v46, %v2498_v46  ;;  %v872_v55 = vmul.f32 0.87758255, %v2498_v46  ;;  %v1079_v5 = vadd.f32 -0.23971277, %v2492_v26 }
 0x25b   : > { %v833_v49 = vsub.f32 1.0, %v829_v47  ;;  %v830_v14 = vmul.f32 %v2502_v48, %v2502_v48  ;;  %v874_v62 = vmul.f32 0.87758255, %v2502_v48  ;;  %v1081_v25 = vadd.f32 -0.23971277, %v2494_v43 }
 0x25c   : > { %v835_v2 = vmax.f32 %v831_v22, 0.0  ;;  %v832_v3 = vsub.f32 1.0, %v828_v27  ;;  %v1080_v44 = vadd.f32 -0.23971277, %v2498_v46  ;;  %v1082_v22 = vadd.f32 -0.23971277, %v2502_v48 }
 0x25d   : > { %v837_v57 = vmax.f32 %v833_v49, 0.0  ;;  %v834_v6 = vsub.f32 1.0, %v830_v14 }
 0x25e   : > { %v839_v7 = vmin.f32 %v835_v2, 1.0  ;;  %v836_v12 = vmax.f32 %v832_v3, 0.0 }
 0x25f   : > { %v841_v20 = vmin.f32 %v837_v57, 1.0  ;;  %v838_v29 = vmax.f32 %v834_v6, 0.0 }
 0x260   : > { %v840_v37 = vmin.f32 %v836_v12, 1.0  ;;  %1429 = vrsqrt.f32 %v839_v7  ;;  %vm845_vm1 = vcmp.eq.f32.partialorder %v839_v7, inf  ;;  %vm847_vm4 = vcmp.eq.f32.partialorder %v839_v7, 0.0 }
 0x261   : > { %v842_v38 = vmin.f32 %v838_v29, 1.0  ;;  %1431 = vrsqrt.f32 %v841_v20  ;;  %v848_v54 = vand.u32 2147483648, %v839_v7  ;;  %vm859_vm5 = vcmp.eq.f32.partialorder %v841_v20, inf }
 0x262   : > { %1433 = vrsqrt.f32 %v840_v37  ;;  %vm852_vm9 = vcmp.eq.f32.partialorder %v840_v37, inf  ;;  %vm854_vm10 = vcmp.eq.f32.partialorder %v840_v37, 0.0  ;;  %v855_v41 = vand.u32 2147483648, %v840_v37 }
 0x263   : > { %1435 = vrsqrt.f32 %v842_v38  ;;  %vm861_vm13 = vcmp.eq.f32.partialorder %v841_v20, 0.0  ;;  %v862_v52 = vand.u32 2147483648, %v841_v20  ;;  %vm866_vm14 = vcmp.eq.f32.partialorder %v842_v38, inf }
 0x264   : > { %v869_v15 = vand.u32 2147483648, %v842_v38  ;;  %vm868_vm15 = vcmp.eq.f32.partialorder %v842_v38, 0.0 }
 0x26a   : > { %v1430_v21 = vpop.eup %1429 }
 0x26b   : > { %v1432_v61 = vpop.eup %1431  ;;  %v844_v50 = vmul.f32 %v1430_v21, %v839_v7 }
 0x26c   : > { %v1434_v32 = vpop.eup %1433  ;;  %v858_v39 = vmul.f32 %v1432_v61, %v841_v20 }
 0x26d   : > { %v1436_v30 = vpop.eup %1435  ;;  %v846_v28 = vsel %vm845_vm1, %v839_v7, %v844_v50  ;;  %v851_v53 = vmul.f32 %v1434_v32, %v840_v37  ;;  %vm884_vm1 = vcmp.gt.f32.partialorder %v2498_v46, -0.87758255 }
 0x26e   : > { %v849_v4 = vsel %vm847_vm4, %v848_v54, %v846_v28  ;;  %v860_v24 = vsel %vm859_vm5, %v841_v20, %v858_v39  ;;  %v865_v31 = vmul.f32 %v1436_v30, %v842_v38  ;;  %vm886_vm4 = vcmp.gt.f32.partialorder %v2502_v48, -0.87758255 }
 0x26f   : > { %v853_v8 = vsel %vm852_vm9, %v840_v37, %v851_v53  ;;  %v863_v11 = vsel %vm861_vm13, %v862_v52, %v860_v24  ;;  %v875_v17 = vmul.f32 0.47942555, %v849_v4 }
 0x270   : > { %v856_v13 = vsel %vm854_vm10, %v855_v41, %v853_v8  ;;  %v867_v1 = vsel %vm866_vm14, %v842_v38, %v865_v31  ;;  %v877_v16 = vmul.f32 0.47942555, %v863_v11 }
 0x271   : > { %v870_v36 = vsel %vm868_vm15, %v869_v15, %v867_v1  ;;  %v876_v63 = vmul.f32 0.47942555, %v856_v13  ;;  %v879_v60 = vsub.f32 %v871_v33, %v875_v17 }
 0x272   : > { %v878_v51 = vmul.f32 0.47942555, %v870_v36  ;;  %v881_v18 = vsub.f32 %v873_v9, %v877_v16 }
 0x273   : > { %v880_v42 = vsub.f32 %v872_v55, %v876_v63  ;;  %v891_v45 = vsel %vm883_vm2, %v879_v60, %v1079_v5  ;;  %vm922_vm2 = vcmp.lt.s32.totalorder %v2517_v34, 1000 }
 0x274   : > { %v882_v47 = vsub.f32 %v874_v62, %v878_v51  ;;  %v893_v27 = vsel %vm885_vm6, %v881_v18, %v1081_v25  ;;  %v913_v49 = vsel %vm909_vm0, %v891_v45, %v2492_v26  ;;  %vm924_vm0 = vcmp.lt.s32.totalorder %v2519_v59, 1000 }
 0x275   : > { %v892_v14 = vsel %vm884_vm1, %v880_v42, %v1080_v44  ;;  %v915_v2 = vsel %vm911_vm3, %v893_v27, %v2494_v43  ;;  %v917_v3 = vmul.f32 30.0, %v913_v49 }
 0x276   : > { %v894_v57 = vsel %vm886_vm4, %v882_v47, %v1082_v22  ;;  %v914_v6 = vsel %vm910_vm7, %v892_v14, %v2498_v46  ;;  %v919_v7 = vmul.f32 30.0, %v915_v2 }
 0x277   : > { %v916_v26 = vsel %vm912_vm11, %v894_v57, %v2502_v48  ;;  %v918_v43 = vmul.f32 30.0, %v914_v6  ;;  %v925_v12 = vsel %vm921_vm8, %v917_v3, 0.0 }
 0x278   : > { %v920_v46 = vmul.f32 30.0, %v916_v26  ;;  %v927_v19 = vsel %vm923_vm12, %v919_v7, 0.0  ;;  %929 = vst [vmem:[%s244_s19] sm:$0xff] %v925_v12 }
 0x279   : > { %v926_v20 = vsel %vm922_vm2, %v918_v43, 0.0  ;;  %931 = vst [vmem:[%s244_s19 + $0x10] sm:$0xff] %v927_v19 }
 0x27a   : > { %v928_v48 = vsel %vm924_vm0, %v920_v46, 0.0  ;;  %930 = vst [vmem:[%s244_s19 + $0x8] sm:$0xff] %v926_v20 }
 0x27b   : > { %932 = vst [vmem:[%s244_s19 + $0x18] sm:$0xff] %v928_v48 }
 0x27c   : > { %1506 = shalt.err (!%p1503_p9)
}
 0x27d   : > { %s1507_s6 = scalar_lea.hbm %s2577_s22, 512  ;;  %s1511_s5 = scalar_lea.hbm %s2631_s3, 1024 }
 0x27e   : > { %p1508_p0 = scmp.ne.s32.totalorder %s2577_s22, %s1507_s6  ;;  %p1512_p6 = scmp.lt.u32.totalorder %s2577_s22, %s2631_s3 }
 0x27f   : > { %p1513_p5 = scmp.lt.u32.totalorder %s1511_s5, %s1507_s6  ;;  %p1515_p13 = scmp.lt.u32.totalorder %s1507_s6, %s2577_s22 }
 0x280   : > { %p1509_p2 = pnand %p1508_p0, %p2934_p12 }
 0x281   : > { %p1514_p10 = por %p1513_p5, %p1512_p6 }
 0x282   : > { %p1510_p11 = pneg %p1509_p2 }
 0x283   : > { %p1516_p1 = por %p1515_p13, %p1514_p10 }
 0x285   : > { %p1517_p7 = pnand %p1516_p1, %p1510_p11 }
 0x287   : > { %1520 = shalt.err (!%p1517_p7)
}
 0x288   : > { %1354 = dma.vmem_to_hbm [thread:$0]  (%p2934_p12), %s2581_s21, 512, %s2577_s22, %s934_s15  }
 0x289 PF: > { %s962_s29 = sand.u32 1, %s1559_s12   ;;  %p2935_p4 = scmp.ne.s32.totalorder %s2718_s28, 0 }
 0x28a   : > { %s963_s9 = scalar_lea.sflag [#allocation4], %s962_s29 }
 0x28b   : > { %p1361_p8 = pnand %p1065_p3, %p2935_p4 }
 0x28d   : > { %1554 = dma.done.wait (!%p1361_p8), %s963_s9, 512  }
 0x28e   : > { %1556 = vsyncadd (!%p1361_p8), %s963_s9, 4294966784  ;;  %s20_s17 = sadd.s32 1, %s1579_s17   ;;  %s2936_s12 = smov %s1563_s13 }
 0x28f   : > { %p17_p9 = scmp.ge.s32.totalorder %s20_s17, 4   ;;  %s2937_s13 = smov %s1567_s14 }
 0x290   : > { %s2938_s14 = smov %s1670_s27  ;;  %s2939_s15 = smov %s1575_s16 }
 0x291   : > { %s2940_s16 = smov %s2942_s20  ;;  %19 = sbr.rel (!%p17_p9) target bundleno = 7 (0x7), region = 86 }
 0x298   :  { %968 = vsyncpa [#allocation3], 1 }
 0x299   :  { %970 = vsyncpa [#allocation3 + $0x1], 1 }
 0x29a   :  { %971 = vsyncpa [#allocation6], 1 }
 0x29b   :  { %973 = vsyncpa [#allocation6 + $0x1], 1 }
 0x29c   :  { %974 = vsyncpa [#allocation4], 1 }
 0x29d   :  { %976 = vsyncpa [#allocation4 + $0x1], 1 }

</bundles_post_ra>
